<compile_context>
chip_gen: v7x
topology: tpu7x:2x2x1
jax: 0.10.0
libtpu: 0.0.40
codegen_flags: <defaults>
</compile_context>

<pallas_src>
import jax
import jax.numpy as jnp
from jax.experimental import pallas as pl
from jax.experimental.pallas import tpu as pltpu

NEG_SLOPE = 0.01  # nn.LeakyReLU default


def _round_up(x, m):
    return (x + m - 1) // m * m


def _edge_mlp_bn_kernel(idx_ref, e_ref, w1e_ref, p_ref, w23_ref, vec_ref, o_ref):
    """One tile of edges: fused gather + 3x(Linear+LeakyReLU) + folded BatchNorm."""
    tile_e = e_ref.shape[0]
    two_n = p_ref.shape[0]          # 2 * n_nodes
    n_nodes = two_n // 2
    out_dim = o_ref.shape[1]

    def lrelu(v):
        return jnp.where(v > 0, v, NEG_SLOPE * v)

    # Single fused in-kernel gather of the per-node first-layer projections:
    # one [tile_e, 2N] one-hot (src rows in [0,N), dst rows in [N,2N)) multiplied
    # against the stacked VMEM-resident table on the MXU.  Exact row select.
    iota = jax.lax.broadcasted_iota(jnp.int32, (tile_e, two_n), 1)
    src = idx_ref[:, 0:1]                       # [tile_e, 1]
    dst = idx_ref[:, 1:2] + n_nodes             # offset into second half of P
    oh = jnp.logical_or(iota == src, iota == dst).astype(jnp.bfloat16)

    # Layer 1:  x @ W1 + b1 == e @ W1_e + oh @ P        (b1 folded into P's src half)
    h = (jnp.dot(e_ref[...], w1e_ref[...], preferred_element_type=jnp.float32)
         + jnp.dot(oh, p_ref[...], preferred_element_type=jnp.float32))
    h = lrelu(h)

    # Layers 2 & 3 (bf16 operands, f32 accumulation / activation).  W2/W3 are stacked
    # along sublanes in one block; static, sublane-aligned slices.
    w2 = w23_ref[0:out_dim, :]
    w3 = w23_ref[out_dim:2 * out_dim, :]
    h = lrelu(jnp.dot(h.astype(jnp.bfloat16), w2,
                      preferred_element_type=jnp.float32) + vec_ref[0:1, :])
    h = lrelu(jnp.dot(h.astype(jnp.bfloat16), w3,
                      preferred_element_type=jnp.float32) + vec_ref[1:2, :])

    # Dropout is identity in eval mode; BatchNorm1d folded to per-channel affine.
    o_ref[...] = (h * vec_ref[2:3, :] + vec_ref[3:4, :]).astype(o_ref.dtype)


def dti_conv_graph3_layer(edge_feats, node_feats, src_idx, dst_idx, params,
                          *, tile_e=1024, out_dtype=jnp.float32):
    """JAX wrapper reproducing DTIConvGraph3Layer.forward (eval mode).

    edge_feats: [E, e_dim] f32     node_feats: [N, n_dim] f32
    src_idx, dst_idx: [E] int      edge endpoints
    params: w1,b1,w2,b2,w3,b3 (W stored as [in,out]) and bn_scale, bn_shift ([out_dim]).
    Returns [E, out_dim] `out_dtype` (float32 by default to match the PyTorch module).
    """
    E, e_dim = edge_feats.shape
    n_nodes, n_dim = node_feats.shape
    in_dim = e_dim + 2 * n_dim
    out_dim = params["w1"].shape[1]
    assert params["w1"].shape[0] == in_dim

    # Tile sizing: multiple of 128 (bf16 sublane pack / clean MXU cadence), big enough to
    # amortize per-step overhead, but capped so the grid has >= 4 steps when E allows
    # (>= 2 steps per v7x core after megacore sharding => pipelining still overlaps).
    GRANULE = 128
    tile_e = max(GRANULE, min(_round_up(tile_e, GRANULE),
                              _round_up(pl.cdiv(E, 4), GRANULE)))
    assert tile_e % GRANULE == 0
    e_pad = _round_up(E, tile_e)
    pad = e_pad - E

    # Split W1 along its input rows and fold the node features (and b1) into the stacked
    # per-node projection table P = [node @ W1_src + b1 ; node @ W1_dst]  (tiny matmuls in f32).
    w1 = params["w1"].astype(jnp.float32)
    node_f32 = node_feats.astype(jnp.float32)
    w1_e = w1[:e_dim].astype(jnp.bfloat16)
    p_src = node_f32 @ w1[e_dim:e_dim + n_dim] + params["b1"].astype(jnp.float32)
    p_dst = node_f32 @ w1[e_dim + n_dim:]
    p_tab = jnp.concatenate([p_src, p_dst], axis=0).astype(jnp.bfloat16)   # [2N, out]
    w23 = jnp.concatenate([params["w2"], params["w3"]], axis=0).astype(jnp.bfloat16)  # [2*out, out]

    # Pack the remaining per-channel f32 vectors into one (8, out_dim) array (single DMA).
    zeros = jnp.zeros((out_dim,), jnp.float32)
    vec = jnp.stack([params["b2"], params["b3"],
                     params["bn_scale"], params["bn_shift"],
                     zeros, zeros, zeros, zeros]).astype(jnp.float32)

    edge_bf16 = edge_feats.astype(jnp.bfloat16)
    idx = jnp.stack([src_idx.astype(jnp.int32), dst_idx.astype(jnp.int32)], axis=1)  # [E, 2]
    if pad:
        edge_bf16 = jnp.pad(edge_bf16, ((0, pad), (0, 0)))
        idx = jnp.pad(idx, ((0, pad), (0, 0)))   # pads select node 0; rows sliced off

    # VMEM budget (bytes): double-buffered per-tile blocks, double-buffered resident tables,
    # plus in-kernel temporaries (one-hot + iota + f32 activations).  Explicit limit keeps
    # headroom predictable on v7x (64 MiB physical / 32 MiB default scoped).
    lane_pad = lambda c: _round_up(max(c, 1), 128)
    vmem_need = (
        2 * tile_e * e_dim * 2                      # edge feature blocks (bf16)
        + 2 * tile_e * lane_pad(2) * 4              # packed index blocks (lane-padded int32)
        + 2 * tile_e * lane_pad(out_dim) * 4        # output blocks (f32)
        + 2 * (2 * n_nodes * out_dim * 2            # P table (bf16)
               + e_dim * out_dim * 2                # W1_e
               + 2 * out_dim * out_dim * 2          # W2 ; W3
               + 8 * lane_pad(out_dim) * 4)         # vec bundle
        + tile_e * 2 * n_nodes * (2 + 4)            # one-hot (bf16) + iota (int32)
        + 3 * tile_e * lane_pad(out_dim) * 4        # f32 activation temporaries
    )
    vmem_limit = min(max(32 << 20, int(vmem_need * 5 // 4)), 64 << 20)

    full = lambda shape: pl.BlockSpec(shape, lambda i: (0, 0))

    out = pl.pallas_call(
        _edge_mlp_bn_kernel,
        out_shape=jax.ShapeDtypeStruct((e_pad, out_dim), out_dtype),
        grid_spec=pltpu.PrefetchScalarGridSpec(
            num_scalar_prefetch=0,
            grid=(e_pad // tile_e,),
            in_specs=[
                pl.BlockSpec((tile_e, 2), lambda i: (i, 0)),      # packed src/dst idx
                pl.BlockSpec((tile_e, e_dim), lambda i: (i, 0)),  # edge feats (bf16)
                full((e_dim, out_dim)),                           # W1_e
                full((2 * n_nodes, out_dim)),                     # P = [node@W1_s + b1 ; node@W1_d]
                full((2 * out_dim, out_dim)),                     # [W2 ; W3]
                full((8, out_dim)),                               # b2,b3,scale,shift
            ],
            out_specs=pl.BlockSpec((tile_e, out_dim), lambda i: (i, 0)),
        ),
        compiler_params=pltpu.CompilerParams(
            dimension_semantics=("parallel",),
            vmem_limit_bytes=vmem_limit),
    )(idx, edge_bf16, w1_e, p_tab, w23, vec)

    return out[:E]


def _reference(edge_feats, node_feats, src_idx, dst_idx, params):
    """Pure-JAX f32 reference of the same forward pass (eval mode)."""
    def lrelu(v):
        return jnp.where(v > 0, v, NEG_SLOPE * v)
    x = jnp.concatenate(
        [edge_feats, node_feats[src_idx], node_feats[dst_idx]], axis=1)
    h = lrelu(x @ params["w1"] + params["b1"])
    h = lrelu(h @ params["w2"] + params["b2"])
    h = lrelu(h @ params["w3"] + params["b3"])
    return h * params["bn_scale"] + params["bn_shift"]


def _init_params(key, in_dim, out_dim):
    """Deterministic parameter init mirroring the module's __init__ shapes."""
    ks = jax.random.split(key, 8)

    def linear(kw, kb, fan_in, fan_out):
        bound = 1.0 / jnp.sqrt(fan_in)
        w = jax.random.uniform(kw, (fan_in, fan_out), jnp.float32, -bound, bound)
        b = jax.random.uniform(kb, (fan_out,), jnp.float32, -bound, bound)
        return w, b

    w1, b1 = linear(ks[0], ks[1], in_dim, out_dim)
    w2, b2 = linear(ks[2], ks[3], out_dim, out_dim)
    w3, b3 = linear(ks[4], ks[5], out_dim, out_dim)

    # BatchNorm1d (eval): gamma, beta random; running stats at defaults.
    gamma = 1.0 + 0.1 * jax.random.normal(ks[6], (out_dim,), jnp.float32)
    beta = 0.1 * jax.random.normal(ks[7], (out_dim,), jnp.float32)
    running_mean = jnp.zeros((out_dim,), jnp.float32)
    running_var = jnp.ones((out_dim,), jnp.float32)
    eps = 1e-5
    scale = gamma / jnp.sqrt(running_var + eps)
    shift = beta - running_mean * scale

    return {"w1": w1, "b1": b1, "w2": w2, "b2": b2, "w3": w3, "b3": b3,
            "bn_scale": scale, "bn_shift": shift}


if __name__ == "__main__":
    key = jax.random.PRNGKey(0)
    k_edge, k_node, k_src, k_dst, k_param = jax.random.split(key, 5)

    # Small synthetic graph (E deliberately NOT a tile multiple to exercise padding).
    num_nodes = 64
    num_edges = 1000
    edge_dim = 32
    node_dim = 48
    in_dim = edge_dim + 2 * node_dim   # 128 = concat([e, h_src, h_dst])
    out_dim = 64
    dropout_p = 0.2                    # unused in eval mode

    edge_feats = jax.random.normal(k_edge, (num_edges, edge_dim), jnp.float32)
    node_feats = jax.random.normal(k_node, (num_nodes, node_dim), jnp.float32)
    src_idx = jax.random.randint(k_src, (num_edges,), 0, num_nodes, jnp.int32)
    dst_idx = jax.random.randint(k_dst, (num_edges,), 0, num_nodes, jnp.int32)

    params = _init_params(k_param, in_dim, out_dim)

    out = dti_conv_graph3_layer(edge_feats, node_feats, src_idx, dst_idx, params)
    out = jax.block_until_ready(out)

    ref = _reference(edge_feats, node_feats, src_idx, dst_idx, params)
    assert out.shape == (num_edges, out_dim)
    # bf16 MXU operands -> looser tolerance than the f32 reference.
    assert jnp.allclose(out, ref, atol=5e-2, rtol=5e-2), "mismatch vs reference"

    print("KERNEL_OK")
</pallas_src>

<mosaic_0001>
module attributes {stable_mosaic.version = 11 : i64} {
  func.func @_edge_mlp_bn_kernel(%arg0: i32, %arg1: memref<256x2xi32, #tpu.memory_space<vmem>>, %arg2: memref<256x32xbf16, #tpu.memory_space<vmem>>, %arg3: memref<32x64xbf16, #tpu.memory_space<vmem>>, %arg4: memref<128x64xbf16, #tpu.memory_space<vmem>>, %arg5: memref<128x64xbf16, #tpu.memory_space<vmem>>, %arg6: memref<8x64xf32, #tpu.memory_space<vmem>>, %arg7: memref<256x64xf32, #tpu.memory_space<vmem>>) attributes {dimension_semantics = [#tpu.dimension_semantics<parallel>], iteration_bounds = array<i64: 4>, scalar_prefetch = 0 : i64, scratch_operands = 0 : i64, tpu.core_type = #tpu.core_type<tc>, window_params = [{transform_indices = @transform_0, window_bounds = array<i64: 256, 2>}, {transform_indices = @transform_1, window_bounds = array<i64: 256, 32>}, {pipeline_mode = #tpu.pipeline_mode<synchronous>, transform_indices = @transform_2, window_bounds = array<i64: 32, 64>}, {pipeline_mode = #tpu.pipeline_mode<synchronous>, transform_indices = @transform_3, window_bounds = array<i64: 128, 64>}, {pipeline_mode = #tpu.pipeline_mode<synchronous>, transform_indices = @transform_4, window_bounds = array<i64: 128, 64>}, {pipeline_mode = #tpu.pipeline_mode<synchronous>, transform_indices = @transform_5, window_bounds = array<i64: 8, 64>}, {transform_indices = @transform_6, window_bounds = array<i64: 256, 64>}]} {
    %0 = tpu.iota {dimensions = array<i32: 1>} : vector<256x128xi32>
    %c0 = arith.constant 0 : index
    %c0_0 = arith.constant 0 : index
    %1 = vector.load %arg1[%c0, %c0_0] : memref<256x2xi32, #tpu.memory_space<vmem>>, vector<256x1xi32>
    %c0_1 = arith.constant 0 : index
    %c1 = arith.constant 1 : index
    %2 = vector.load %arg1[%c0_1, %c1] : memref<256x2xi32, #tpu.memory_space<vmem>>, vector<256x1xi32>
    %c64_i32 = arith.constant 64 : i32
    %3 = vector.broadcast %c64_i32 : i32 to vector<256x1xi32>
    %4 = arith.addi %2, %3 : vector<256x1xi32>
    %5 = vector.broadcast %1 : vector<256x1xi32> to vector<256x128xi32>
    %6 = arith.cmpi eq, %0, %5 : vector<256x128xi32>
    %7 = vector.broadcast %4 : vector<256x1xi32> to vector<256x128xi32>
    %8 = arith.cmpi eq, %0, %7 : vector<256x128xi32>
    %9 = arith.ori %6, %8 : vector<256x128xi1>
    %10 = arith.extui %9 : vector<256x128xi1> to vector<256x128xi32>
    %11 = arith.sitofp %10 : vector<256x128xi32> to vector<256x128xf32>
    %12 = arith.truncf %11 : vector<256x128xf32> to vector<256x128xbf16>
    %c0_2 = arith.constant 0 : index
    %c0_3 = arith.constant 0 : index
    %13 = vector.load %arg2[%c0_2, %c0_3] : memref<256x32xbf16, #tpu.memory_space<vmem>>, vector<256x32xbf16>
    %c0_4 = arith.constant 0 : index
    %c0_5 = arith.constant 0 : index
    %14 = vector.load %arg3[%c0_4, %c0_5] : memref<32x64xbf16, #tpu.memory_space<vmem>>, vector<32x64xbf16>
    %cst = arith.constant dense<0.000000e+00> : vector<256x64xf32>
    %15 = tpu.matmul %13, %14, %cst {dimension_numbers = #tpu.dot_dimension_numbers<[1], [0], [0], [1], [0, 0, 1, 1], [], []>} : vector<256x32xbf16>, vector<32x64xbf16>, vector<256x64xf32> -> vector<256x64xf32>
    %c0_6 = arith.constant 0 : index
    %c0_7 = arith.constant 0 : index
    %16 = vector.load %arg4[%c0_6, %c0_7] : memref<128x64xbf16, #tpu.memory_space<vmem>>, vector<128x64xbf16>
    %cst_8 = arith.constant dense<0.000000e+00> : vector<256x64xf32>
    %17 = tpu.matmul %12, %16, %cst_8 {dimension_numbers = #tpu.dot_dimension_numbers<[1], [0], [0], [1], [0, 0, 1, 1], [], []>} : vector<256x128xbf16>, vector<128x64xbf16>, vector<256x64xf32> -> vector<256x64xf32>
    %18 = arith.addf %15, %17 : vector<256x64xf32>
    %cst_9 = arith.constant 0.000000e+00 : f32
    %19 = vector.broadcast %cst_9 : f32 to vector<256x64xf32>
    %20 = arith.cmpf ogt, %18, %19 : vector<256x64xf32>
    %cst_10 = arith.constant 0.00999999977 : f32
    %21 = vector.broadcast %cst_10 : f32 to vector<256x64xf32>
    %22 = arith.mulf %21, %18 : vector<256x64xf32>
    %23 = arith.select %20, %18, %22 : vector<256x64xi1>, vector<256x64xf32>
    %c0_11 = arith.constant 0 : index
    %c0_12 = arith.constant 0 : index
    %24 = vector.load %arg5[%c0_11, %c0_12] : memref<128x64xbf16, #tpu.memory_space<vmem>>, vector<64x64xbf16>
    %c64 = arith.constant 64 : index
    %c0_13 = arith.constant 0 : index
    %25 = vector.load %arg5[%c64, %c0_13] : memref<128x64xbf16, #tpu.memory_space<vmem>>, vector<64x64xbf16>
    %26 = arith.truncf %23 : vector<256x64xf32> to vector<256x64xbf16>
    %cst_14 = arith.constant dense<0.000000e+00> : vector<256x64xf32>
    %27 = tpu.matmul %26, %24, %cst_14 {dimension_numbers = #tpu.dot_dimension_numbers<[1], [0], [0], [1], [0, 0, 1, 1], [], []>} : vector<256x64xbf16>, vector<64x64xbf16>, vector<256x64xf32> -> vector<256x64xf32>
    %c0_15 = arith.constant 0 : index
    %c0_16 = arith.constant 0 : index
    %28 = vector.load %arg6[%c0_15, %c0_16] : memref<8x64xf32, #tpu.memory_space<vmem>>, vector<1x64xf32>
    %29 = vector.broadcast %28 : vector<1x64xf32> to vector<256x64xf32>
    %30 = arith.addf %27, %29 : vector<256x64xf32>
    %cst_17 = arith.constant 0.000000e+00 : f32
    %31 = vector.broadcast %cst_17 : f32 to vector<256x64xf32>
    %32 = arith.cmpf ogt, %30, %31 : vector<256x64xf32>
    %cst_18 = arith.constant 0.00999999977 : f32
    %33 = vector.broadcast %cst_18 : f32 to vector<256x64xf32>
    %34 = arith.mulf %33, %30 : vector<256x64xf32>
    %35 = arith.select %32, %30, %34 : vector<256x64xi1>, vector<256x64xf32>
    %36 = arith.truncf %35 : vector<256x64xf32> to vector<256x64xbf16>
    %cst_19 = arith.constant dense<0.000000e+00> : vector<256x64xf32>
    %37 = tpu.matmul %36, %25, %cst_19 {dimension_numbers = #tpu.dot_dimension_numbers<[1], [0], [0], [1], [0, 0, 1, 1], [], []>} : vector<256x64xbf16>, vector<64x64xbf16>, vector<256x64xf32> -> vector<256x64xf32>
    %c1_20 = arith.constant 1 : index
    %c0_21 = arith.constant 0 : index
    %38 = vector.load %arg6[%c1_20, %c0_21] : memref<8x64xf32, #tpu.memory_space<vmem>>, vector<1x64xf32>
    %39 = vector.broadcast %38 : vector<1x64xf32> to vector<256x64xf32>
    %40 = arith.addf %37, %39 : vector<256x64xf32>
    %cst_22 = arith.constant 0.000000e+00 : f32
    %41 = vector.broadcast %cst_22 : f32 to vector<256x64xf32>
    %42 = arith.cmpf ogt, %40, %41 : vector<256x64xf32>
    %cst_23 = arith.constant 0.00999999977 : f32
    %43 = vector.broadcast %cst_23 : f32 to vector<256x64xf32>
    %44 = arith.mulf %43, %40 : vector<256x64xf32>
    %45 = arith.select %42, %40, %44 : vector<256x64xi1>, vector<256x64xf32>
    %c2 = arith.constant 2 : index
    %c0_24 = arith.constant 0 : index
    %46 = vector.load %arg6[%c2, %c0_24] : memref<8x64xf32, #tpu.memory_space<vmem>>, vector<1x64xf32>
    %47 = vector.broadcast %46 : vector<1x64xf32> to vector<256x64xf32>
    %48 = arith.mulf %45, %47 : vector<256x64xf32>
    %c3 = arith.constant 3 : index
    %c0_25 = arith.constant 0 : index
    %49 = vector.load %arg6[%c3, %c0_25] : memref<8x64xf32, #tpu.memory_space<vmem>>, vector<1x64xf32>
    %50 = vector.broadcast %49 : vector<1x64xf32> to vector<256x64xf32>
    %51 = arith.addf %48, %50 : vector<256x64xf32>
    %c0_26 = arith.constant 0 : index
    %c0_27 = arith.constant 0 : index
    %52 = vector.load %arg7[%c0_26, %c0_27] : memref<256x64xf32, #tpu.memory_space<vmem>>, vector<256x64xf32>
    tpu.vector_store %arg7[%c0_26, %c0_27], %51 {strides = array<i32>} : memref<256x64xf32, #tpu.memory_space<vmem>>, vector<256x64xf32>,
    return
  }
  func.func @transform_0(%arg0: i32) -> (i32, i32) {
    %c0_i32 = arith.constant 0 : i32
    %c0_i32_0 = arith.constant 0 : i32
    return %arg0, %c0_i32 : i32, i32
  }
  func.func @transform_1(%arg0: i32) -> (i32, i32) {
    %c0_i32 = arith.constant 0 : i32
    %c0_i32_0 = arith.constant 0 : i32
    return %arg0, %c0_i32 : i32, i32
  }
  func.func @transform_2(%arg0: i32) -> (i32, i32) {
    %c0_i32 = arith.constant 0 : i32
    %c0_i32_0 = arith.constant 0 : i32
    %c0_i32_1 = arith.constant 0 : i32
    return %c0_i32, %c0_i32_0 : i32, i32
  }
  func.func @transform_3(%arg0: i32) -> (i32, i32) {
    %c0_i32 = arith.constant 0 : i32
    %c0_i32_0 = arith.constant 0 : i32
    %c0_i32_1 = arith.constant 0 : i32
    return %c0_i32, %c0_i32_0 : i32, i32
  }
  func.func @transform_4(%arg0: i32) -> (i32, i32) {
    %c0_i32 = arith.constant 0 : i32
    %c0_i32_0 = arith.constant 0 : i32
    %c0_i32_1 = arith.constant 0 : i32
    return %c0_i32, %c0_i32_0 : i32, i32
  }
  func.func @transform_5(%arg0: i32) -> (i32, i32) {
    %c0_i32 = arith.constant 0 : i32
    %c0_i32_0 = arith.constant 0 : i32
    %c0_i32_1 = arith.constant 0 : i32
    return %c0_i32, %c0_i32_0 : i32, i32
  }
  func.func @transform_6(%arg0: i32) -> (i32, i32) {
    %c0_i32 = arith.constant 0 : i32
    %c0_i32_0 = arith.constant 0 : i32
    return %arg0, %c0_i32 : i32, i32
  }
}

</mosaic_0001>

<bundles_post_ra>
// kernel: tpu_custom_call.1
= control target key start
LH: loop header
LB: loop body
LE: loop exit
PB: predicated region body
PF: predicated region fallthrough
CT: control target
= control target key end

     0   :  { %s2827_s21 = smov 0   ;;  %s3392_s0 = inlined_call_operand.vmem [shape: s32[1024,2], index: 0, kind: input, shape index: {}]   ;;  %s3393_s1 = inlined_call_operand.vmem [shape: bf16[1024,32], index: 1, kind: input, shape index: {}]   ;;  %s3394_s2 = inlined_call_operand.vmem [shape: bf16[32,64], index: 2, kind: input, shape index: {}]   ;;  %s3395_s3 = inlined_call_operand.vmem [shape: bf16[128,64], index: 3, kind: input, shape index: {}]   ;;  %s3396_s4 = inlined_call_operand.vmem [shape: bf16[128,64], index: 4, kind: input, shape index: {}]   ;;  %s3397_s5 = inlined_call_operand.vmem [shape: f32[8,64], index: 5, kind: input, shape index: {}]   ;;  %s3398_s6 = inlined_call_operand.vmem [shape: f32[1024,64], index: 6, kind: output, shape index: {}]  }
   0x1 LB: > { %s2262_s22 = sadd.s32 4294967295, %s2787_s21   ;;  %p2266_p0 = scmp.ge.s32.totalorder %s2787_s21, 1  ;;  %s2787_s21 = sphi %s2827_s21, %s16_s21  }
   0x2   : > { %p224_p1 = scmp.lt.s32.totalorder %s2787_s21, 5 }
   0x4   : > { %p225_p2 = pnand %p2266_p0, %p224_p1 }
   0x5   : > { %s2267_s23 = sshll.u32 (!%p225_p2), %s2262_s22, 5  ;;  %v2789_v0 = vmov (!%p225_p2), 0   ;;  %v2790_v1 = vmov (!%p225_p2), 1   ;;  %v2747_v15 = vld [vmem:[%s3395_s3] sm:$0xff] (!%p225_p2)   ;;  %v2748_v22 = vld [vmem:[%s3395_s3 + $0x8] sm:$0xff] (!%p225_p2)   ;;  %v2749_v25 = vld [vmem:[%s3395_s3 + $0x10] sm:$0xff] (!%p225_p2)  }
   0x6   : > { %228 = sbr.rel (%p225_p2) target bundleno = 1062 (0x426), region = 44  ;;  %2714 = vset.pattern.permute.xlu1 (!%p225_p2), %v2789_v0  ;;  %p260_p3 = scmp.lt.s32.totalorder (!%p225_p2), %s2267_s23, 127  ;;  %2716 = vset.pattern.permute.xlu0 (!%p225_p2), %v2790_v1  ;;  %v2750_v28 = vld [vmem:[%s3395_s3 + $0x18] sm:$0xff] (!%p225_p2)   ;;  %v2751_v30 = vld [vmem:[%s3395_s3 + $0x20] sm:$0xff] (!%p225_p2)   ;;  %v2752_v31 = vld [vmem:[%s3395_s3 + $0x28] sm:$0xff] (!%p225_p2)  }
   0x7   : > { %2507 = vmatprep.subr.bf16.mxu0 (!%p225_p2), %v2747_v15  ;;  %v2753_v33 = vld [vmem:[%s3395_s3 + $0x30] sm:$0xff] (!%p225_p2)   ;;  %v2754_v35 = vld [vmem:[%s3395_s3 + $0x38] sm:$0xff] (!%p225_p2)   ;;  %v2960_v63 = vld [vmem:[%s3394_s2] sm:$0xff] (!%p225_p2)  }
   0x8   : > { %2508 = vmatpush3.bf16.msra.mxu0 (!%p225_p2), %v2747_v15 }
   0x9   : > { %2509 = vmatprep.subr.bf16.mxu0 (!%p225_p2), %v2748_v22 }
   0xc   : > { %2510 = vmatpush3.bf16.msra.mxu0 (!%p225_p2), %v2748_v22 }
   0xd   : > { %s3400_s23 = smov (!%p260_p3, %s2267_s23), 127  ;;  %2511 = vmatprep.subr.bf16.mxu0 %v2749_v25 }
   0xe   : > { %s2268_s24 = sshll.u32 %s3400_s23, 3  ;;  %s2270_s28 = sshll.u32 %s3400_s23, 2 }
   0xf   : > { %s2845_s27 = scalar_lea.vmem %s3392_s0, %s2268_s24  ;;  %s2877_s9 = scalar_lea.vmem %s3393_s1, %s2270_s28 }
  0x10   : > { %v283_v2 = vld [vmem:[%s2845_s27 + $0x18] sm:$0xff]  ;;  %v2849_v3 = vld [vmem:[%s2845_s27 + $0x10] sm:$0xff]  ;;  %v280_v4 = vld [vmem:[%s2845_s27] sm:$0xff]  ;;  %2512 = vmatpush3.bf16.msra.mxu0 %v2749_v25  ;;  %s3232_s13 = scalar_lea.vmem %s3398_s6, %s2268_s24 }
  0x11   : > { %354 = vperm.xlu1 %2714, %v283_v2   ;;  %v314_v5 = vadd.s32 64, %v2849_v3  ;;  %v2854_v6 = vld [vmem:[%s2845_s27 + $0x30] sm:$0xff]  ;;  %v312_v7 = vadd.s32 64, %v280_v4  ;;  %v281_v9 = vld [vmem:[%s2845_s27 + $0x8] sm:$0xff]  ;;  %v315_v16 = vadd.s32 64, %v283_v2  ;;  %v284_v17 = vld [vmem:[%s2845_s27 + $0x20] sm:$0xff]  ;;  %2513 = vmatprep.subr.bf16.mxu0 %v2750_v28 }
  0x12   : > { %v318_v8 = vadd.s32 64, %v2854_v6  ;;  %v2859_v10 = vld [vmem:[%s2845_s27 + $0x50] sm:$0xff]  ;;  %v313_v11 = vadd.s32 64, %v281_v9  ;;  %v316_v21 = vadd.s32 64, %v284_v17  ;;  %v285_v26 = vld [vmem:[%s2845_s27 + $0x28] sm:$0xff]  ;;  %v287_v32 = vld [vmem:[%s2845_s27 + $0x38] sm:$0xff] }
  0x13   : > { %479 = vperm.xlu0 %2716, %v314_v5   ;;  %v322_v12 = vadd.s32 64, %v2859_v10  ;;  %v2865_v13 = vld [vmem:[%s2845_s27 + $0x70] sm:$0xff]  ;;  %v317_v29 = vadd.s32 64, %v285_v26  ;;  %v319_v34 = vadd.s32 64, %v287_v32  ;;  %v288_v36 = vld [vmem:[%s2845_s27 + $0x40] sm:$0xff]  ;;  %v289_v38 = vld [vmem:[%s2845_s27 + $0x48] sm:$0xff] }
  0x14   : > { %v2868_v14 = vld [vmem:[%s2845_s27 + $0x90] sm:$0xff]  ;;  %v326_v18 = vadd.s32 64, %v2865_v13  ;;  %2514 = vmatpush3.bf16.msra.mxu0 %v2750_v28  ;;  %v320_v37 = vadd.s32 64, %v288_v36  ;;  %v321_v39 = vadd.s32 64, %v289_v38  ;;  %v291_v40 = vld [vmem:[%s2845_s27 + $0x58] sm:$0xff]  ;;  %v293_v41 = vld [vmem:[%s2845_s27 + $0x68] sm:$0xff] }
  0x15   : > { %2715 = vset.pattern.permute.xlu1 %v2790_v1  ;;  %v330_v19 = vadd.s32 64, %v2868_v14  ;;  %v2882_v20 = vld [vmem:[%s2845_s27 + $0xb0] sm:$0xff]  ;;  %2515 = vmatprep.subr.bf16.mxu0 %v2751_v30  ;;  %v323_v42 = vadd.s32 64, %v291_v40  ;;  %v292_v43 = vld [vmem:[%s2845_s27 + $0x60] sm:$0xff]  ;;  %v297_v44 = vld [vmem:[%s2845_s27 + $0x88] sm:$0xff]  ;;  %v325_v46 = vadd.s32 64, %v293_v41 }
  0x16   : > { %473 = vperm.xlu1 %2715, %v312_v7   ;;  %v2888_v23 = vld [vmem:[%s2845_s27 + $0xd0] sm:$0xff]  ;;  %v334_v24 = vadd.s32 64, %v2882_v20  ;;  %v324_v45 = vadd.s32 64, %v292_v43  ;;  %v301_v47 = vld [vmem:[%s2845_s27 + $0xa8] sm:$0xff]  ;;  %v295_v48 = vld [vmem:[%s2845_s27 + $0x78] sm:$0xff]  ;;  %v329_v55 = vadd.s32 64, %v297_v44 }
  0x17   : > { %491 = vperm.xlu0 %2716, %v318_v8   ;;  %v338_v27 = vadd.s32 64, %v2888_v23  ;;  %v305_v49 = vld [vmem:[%s2845_s27 + $0xc8] sm:$0xff]  ;;  %v327_v50 = vadd.s32 64, %v295_v48  ;;  %v296_v51 = vld [vmem:[%s2845_s27 + $0x80] sm:$0xff]  ;;  %v310_v54 = vld [vmem:[%s2845_s27 + $0xf0] sm:$0xff]  ;;  %v333_v61 = vadd.s32 64, %v301_v47 }
  0x18   : > { %2516 = vmatpush3.bf16.msra.mxu0 %v2751_v30  ;;  %v2943_v52 = vld [vmem:[%s2845_s27 + $0xe8] sm:$0xff]  ;;  %v328_v53 = vadd.s32 64, %v296_v51  ;;  %v342_v56 = vadd.s32 64, %v310_v54  ;;  %v299_v57 = vld [vmem:[%s2845_s27 + $0x98] sm:$0xff]  ;;  %v300_v59 = vld [vmem:[%s2845_s27 + $0xa0] sm:$0xff] }
  0x19   : > { %2517 = vmatprep.subr.bf16.mxu0 %v2752_v31  ;;  %v331_v58 = vadd.s32 64, %v299_v57  ;;  %v332_v60 = vadd.s32 64, %v300_v59  ;;  %v303_v62 = vld [vmem:[%s2845_s27 + $0xb8] sm:$0xff]  ;;  %v304_v7 = vld [vmem:[%s2845_s27 + $0xc0] sm:$0xff] }
  0x1a   : > { %476 = vperm.xlu1 %2715, %v313_v11  }
  0x1b   : > { %503 = vperm.xlu0 %2716, %v322_v12  }
  0x1c   : > { %2518 = vmatpush3.bf16.msra.mxu0 %v2752_v31  ;;  %v2791_v31 = vmov 1.0|1.0  }
  0x1d   : > { %2519 = vmatprep.subr.bf16.mxu0 %v2753_v33 }
  0x1e   : > { %482 = vperm.xlu1 %2715, %v315_v16  }
  0x1f   : > { %515 = vperm.xlu0 %2716, %v326_v18  }
  0x20   : > { %2520 = vmatpush3.bf16.msra.mxu0 %v2753_v33  ;;  %v2756_v33 = vld [vmem:[%s3394_s2 + $0x8] sm:$0xff]  }
  0x21   : > { %2521 = vmatprep.subr.bf16.mxu0 %v2754_v35 }
  0x22   : > { %2717 = vset.pattern.permute.xlu1 %v2789_v0 }
  0x23   : > { %527 = vperm.xlu0 %2716, %v330_v19   ;;  %357 = vperm.xlu1 %2717, %v284_v17   ;;  %v307_v17 = vld [vmem:[%s2845_s27 + $0xd8] sm:$0xff] }
  0x24   : > { %2522 = vmatpush3.bf16.msra.mxu0 %v2754_v35  ;;  %v339_v19 = vadd.s32 64, %v307_v17 }
  0x25   : > { %2555 = vmatprep.subr.bf16.mxu0 %v2960_v63 }
  0x27   : > { %539 = vperm.xlu0 %2716, %v334_v24   ;;  %2718 = vset.pattern.permute.xlu1 %v2790_v1 }
  0x28   : > { %485 = vperm.xlu1 %2718, %v316_v21   ;;  %v278_v21 = vlaneseq }
  0x2b   : > { %551 = vperm.xlu0 %2716, %v338_v27  }
  0x2c   : > { %488 = vperm.xlu1 %2718, %v317_v29  }
  0x2f   : > { %2740 = vset.pattern.permute.xlu0 %v2789_v0 }
  0x30   : > { %345 = vperm.xlu0 %2740, %v280_v4   ;;  %2719 = vset.pattern.permute.xlu1 %v2789_v0 }
  0x31   : > { %366 = vperm.xlu1 %2719, %v287_v32   ;;  %v341_v32 = vadd.s32 64, %v2943_v52 }
  0x34   : > { %348 = vperm.xlu0 %2740, %v281_v9  }
  0x35   : > { %2720 = vset.pattern.permute.xlu1 %v2790_v1 }
  0x36   : > { %494 = vperm.xlu1 %2720, %v319_v34  }
  0x38   : > { %351 = vperm.xlu0 %2740, %v2849_v3   ;;  %v335_v3 = vadd.s32 64, %v303_v62 }
  0x3a   : > { %2721 = vset.pattern.permute.xlu1 %v2789_v0 }
  0x3b   : > { %369 = vperm.xlu1 %2721, %v288_v36   ;;  %v311_v36 = vld [vmem:[%s2845_s27 + $0xf8] sm:$0xff] }
  0x3c   : > { %360 = vperm.xlu0 %2740, %v285_v26   ;;  %v308_v26 = vld [vmem:[%s2845_s27 + $0xe0] sm:$0xff] }
  0x3d   : > { %v340_v28 = vadd.s32 64, %v308_v26 }
  0x3f   : > { %2722 = vset.pattern.permute.xlu1 %v2790_v1 }
  0x40   : > { %363 = vperm.xlu0 %2740, %v2854_v6   ;;  %497 = vperm.xlu1 %2722, %v320_v37  }
  0x44   : > { %372 = vperm.xlu0 %2740, %v289_v38   ;;  %500 = vperm.xlu1 %2722, %v321_v39   ;;  %v343_v39 = vadd.s32 64, %v311_v36 }
  0x48   : > { %375 = vperm.xlu0 %2740, %v2859_v10   ;;  %2723 = vset.pattern.permute.xlu1 %v2789_v0  ;;  %v336_v10 = vadd.s32 64, %v304_v7 }
  0x49   : > { %378 = vperm.xlu1 %2723, %v291_v40  }
  0x4c   : > { %384 = vperm.xlu0 %2740, %v293_v41  }
  0x4d   : > { %2724 = vset.pattern.permute.xlu1 %v2790_v1 }
  0x4e   : > { %506 = vperm.xlu1 %2724, %v323_v42  }
  0x50   : > { %387 = vperm.xlu0 %2740, %v2865_v13   ;;  %v337_v13 = vadd.s32 64, %v305_v49 }
  0x52   : > { %2725 = vset.pattern.permute.xlu1 %v2789_v0 }
  0x53   : > { %381 = vperm.xlu1 %2725, %v292_v43  }
  0x54   : > { %396 = vperm.xlu0 %2740, %v297_v44  }
  0x57   : > { %2726 = vset.pattern.permute.xlu1 %v2790_v1 }
  0x58   : > { %399 = vperm.xlu0 %2740, %v2868_v14   ;;  %509 = vperm.xlu1 %2726, %v324_v45  }
  0x5c   : > { %408 = vperm.xlu0 %2740, %v301_v47   ;;  %512 = vperm.xlu1 %2726, %v325_v46  }
  0x60   : > { %411 = vperm.xlu0 %2740, %v2882_v20   ;;  %2727 = vset.pattern.permute.xlu1 %v2789_v0 }
  0x61   : > { %390 = vperm.xlu1 %2727, %v295_v48  }
  0x64   : > { %420 = vperm.xlu0 %2740, %v305_v49  }
  0x65   : > { %2728 = vset.pattern.permute.xlu1 %v2790_v1 }
  0x66   : > { %518 = vperm.xlu1 %2728, %v327_v50  }
  0x68   : > { %423 = vperm.xlu0 %2740, %v2888_v23   ;;  %v2983_v23 = vand.u32 127, %v278_v21  ;;  %v2759_v21 = vld [vmem:[%s2877_s9 + $0x10] sm:$0xff]  }
  0x6a   : > { %2729 = vset.pattern.permute.xlu1 %v2789_v0 }
  0x6b   : > { %393 = vperm.xlu1 %2729, %v296_v51  }
  0x6c   : > { %432 = vperm.xlu0 %2740, %v2943_v52  }
  0x6f   : > { %2730 = vset.pattern.permute.xlu1 %v2790_v1 }
  0x70   : > { %521 = vperm.xlu1 %2730, %v328_v53   ;;  %435 = vperm.xlu0 %2740, %v310_v54  }
  0x74   : > { %524 = vperm.xlu1 %2730, %v329_v55   ;;  %2745 = vset.pattern.permute.xlu0 %v2790_v1 }
  0x75   : > { %563 = vperm.xlu0 %2745, %v342_v56  }
  0x78   : > { %2731 = vset.pattern.permute.xlu1 %v2789_v0 }
  0x79   : > { %402 = vperm.xlu1 %2731, %v299_v57  }
  0x7d   : > { %2732 = vset.pattern.permute.xlu1 %v2790_v1 }
  0x7e   : > { %530 = vperm.xlu1 %2732, %v331_v58  }
  0x82   : > { %2733 = vset.pattern.permute.xlu1 %v2789_v0 }
  0x83   : > { %405 = vperm.xlu1 %2733, %v300_v59   ;;  %v2773_v59 = vld [vmem:[%s3396_s4] sm:$0xff]  }
  0x84   : > { %2591 = vmatprep.subr.bf16.mxu1 %v2773_v59 }
  0x85   : > { %2592 = vmatpush3.bf16.msra.mxu1 %v2773_v59  ;;  %v2779_v59 = vld [vmem:[%s3396_s4 + $0x30] sm:$0xff]  }
  0x87   : > { %2734 = vset.pattern.permute.xlu1 %v2790_v1 }
  0x88   : > { %533 = vperm.xlu1 %2734, %v332_v60   ;;  %v2774_v60 = vld [vmem:[%s3396_s4 + $0x8] sm:$0xff]  }
  0x89   : > { %2593 = vmatprep.subr.bf16.mxu1 %v2774_v60 }
  0x8a   : > { %2594 = vmatpush3.bf16.msra.mxu1 %v2774_v60 }
  0x8c   : > { %536 = vperm.xlu1 %2734, %v333_v61  }
  0x90   : > { %v355_v2 = vpop.permute.xlu1 %354  ;;  %2735 = vset.pattern.permute.xlu1 %v2789_v0 }
  0x91   : > { %414 = vperm.xlu1 %2735, %v303_v62   ;;  %vm443_vm9 = vcmp.eq.s32.totalorder %v2983_v23, %v355_v2 }
  0x92   : > { %v480_v4 = vpop.permute.xlu0 %479 }
  0x93   : > { %vm570_vm7 = vcmp.eq.s32.totalorder %v2983_v23, %v480_v4 }
  0x95   : > { %2736 = vset.pattern.permute.xlu1 %v2790_v1  ;;  %v474_v5 = vpop.permute.xlu1 %473 }
  0x96   : > { %542 = vperm.xlu1 %2736, %v335_v3   ;;  %v2965_v6 = vpop.permute.xlu0 %491  ;;  %vm568_vm1 = vcmp.eq.s32.totalorder %v2983_v23, %v474_v5 }
  0x99   : > { %v477_v8 = vpop.permute.xlu1 %476 }
  0x9a   : > { %2737 = vset.pattern.permute.xlu1 %v2789_v0  ;;  %v2969_v9 = vpop.permute.xlu0 %503  ;;  %vm569_vm2 = vcmp.eq.s32.totalorder %v2983_v23, %v477_v8 }
  0x9b   : > { %417 = vperm.xlu1 %2737, %v304_v7  }
  0x9d   : > { %v483_v11 = vpop.permute.xlu1 %482 }
  0x9e   : > { %v2971_v12 = vpop.permute.xlu0 %515  ;;  %vm571_vm5 = vcmp.eq.s32.totalorder %v2983_v23, %v483_v11 }
  0x9f   : > { %2738 = vset.pattern.permute.xlu1 %v2790_v1  ;;  %vm603_vm10 = vmor %vm443_vm9, %vm571_vm5  ;;  %vm574_vm5 = vcmp.eq.s32.totalorder %v2983_v23, %v2965_v6 }
  0xa0   : > { %545 = vperm.xlu1 %2738, %v336_v10  }
  0xa2   : > { %v358_v14 = vpop.permute.xlu1 %357  ;;  %v2974_v15 = vpop.permute.xlu0 %527 }
  0xa3   : > { %vm444_vm15 = vcmp.eq.s32.totalorder %v2983_v23, %v358_v14 }
  0xa4   : > { %548 = vperm.xlu1 %2738, %v337_v13  }
  0xa6   : > { %v2976_v16 = vpop.permute.xlu0 %539 }
  0xa7   : > { %v486_v18 = vpop.permute.xlu1 %485 }
  0xa8   : > { %2739 = vset.pattern.permute.xlu1 %v2789_v0  ;;  %vm572_vm12 = vcmp.eq.s32.totalorder %v2983_v23, %v486_v18 }
  0xa9   : > { %426 = vperm.xlu1 %2739, %v307_v17  }
  0xaa   : > { %v2980_v20 = vpop.permute.xlu0 %551 }
  0xab   : > { %v489_v22 = vpop.permute.xlu1 %488 }
  0xad   : > { %2741 = vset.pattern.permute.xlu1 %v2790_v1 }
  0xae   : > { %554 = vperm.xlu1 %2741, %v339_v19   ;;  %v2757_v19 = vld [vmem:[%s2877_s9] sm:$0xff]  }
  0xaf   : > { %v346_v24 = vpop.permute.xlu0 %345 }
  0xb0   : > { %v367_v25 = vpop.permute.xlu1 %366  ;;  %vm440_vm0 = vcmp.eq.s32.totalorder %v2983_v23, %v346_v24  ;;  %v2762_v24 = vld [vmem:[%s2877_s9 + $0x28] sm:$0xff]  }
  0xb1   : > { %vm600_vm4 = vmor %vm440_vm0, %vm568_vm1  ;;  %vm573_vm1 = vcmp.eq.s32.totalorder %v2983_v23, %v489_v22  ;;  %v2760_v22 = vld [vmem:[%s2877_s9 + $0x18] sm:$0xff]  }
  0xb2   : > { %2742 = vset.pattern.permute.xlu1 %v2789_v0  ;;  %vm604_vm0 = vmor %vm444_vm15, %vm572_vm12 }
  0xb3   : > { %v349_v27 = vpop.permute.xlu0 %348  ;;  %429 = vperm.xlu1 %2742, %v308_v26   ;;  %v2764_v26 = vld [vmem:[%s2877_s9 + $0x38] sm:$0xff]  }
  0xb4   : > { %vm441_vm3 = vcmp.eq.s32.totalorder %v2983_v23, %v349_v27  ;;  %v2765_v27 = vld [vmem:[%s2877_s9 + $0x40] sm:$0xff]  }
  0xb5   : > { %v495_v29 = vpop.permute.xlu1 %494  ;;  %vm601_vm6 = vmor %vm441_vm3, %vm569_vm2 }
  0xb6   : > { %vm2313_vm8 = vmpackc.low %vm601_vm6, %vm600_vm4  ;;  %vm575_vm3 = vcmp.eq.s32.totalorder %v2983_v23, %v495_v29  ;;  %v2767_v29 = vld [vmem:[%s2877_s9 + $0x50] sm:$0xff]  }
  0xb7   : > { %v352_v30 = vpop.permute.xlu0 %351  ;;  %2743 = vset.pattern.permute.xlu1 %v2790_v1  ;;  %2523 = vmatprep.mubr.msk.bf16.mxu0 %vm2313_vm8, %v2791_v31 }
  0xb8   : > { %vm442_vm11 = vcmp.eq.s32.totalorder %v2983_v23, %v352_v30  ;;  %557 = vperm.xlu1 %2743, %v340_v28   ;;  %v2766_v28 = vld [vmem:[%s2877_s9 + $0x48] sm:$0xff]   ;;  %v2768_v30 = vld [vmem:[%s2877_s9 + $0x58] sm:$0xff]  }
  0xb9   : > { %vm602_vm13 = vmor %vm442_vm11, %vm570_vm7  ;;  %vm447_vm7 = vcmp.eq.s32.totalorder %v2983_v23, %v367_v25  ;;  %v2763_v25 = vld [vmem:[%s2877_s9 + $0x30] sm:$0xff]  }
  0xba   : > { %vm2315_vm14 = vmpackc.low %vm603_vm10, %vm602_vm13  ;;  %v370_v34 = vpop.permute.xlu1 %369 }
  0xbb   : > { %v361_v35 = vpop.permute.xlu0 %360  ;;  %2524 = vmatmul.mubr.msk.bf16.vlgmr.msra.gmra.mrb[0].mxu0 %vm2315_vm14, %v2791_v31  ;;  %vm607_vm8 = vmor %vm447_vm7, %vm575_vm3  ;;  %vm448_vm13 = vcmp.eq.s32.totalorder %v2983_v23, %v370_v34  ;;  %vm578_vm3 = vcmp.eq.s32.totalorder %v2983_v23, %v2969_v9  ;;  %v2772_v34 = vld [vmem:[%s2877_s9 + $0x78] sm:$0xff]  }
  0xbc   : > { %vm445_vm2 = vcmp.eq.s32.totalorder %v2983_v23, %v361_v35  ;;  %560 = vperm.xlu1 %2743, %v341_v32   ;;  %2556 = vmatpush3.bf16.msra.mxu0 %v2960_v63  ;;  %v2770_v32 = vld [vmem:[%s2877_s9 + $0x68] sm:$0xff]   ;;  %v2775_v35 = vld [vmem:[%s3396_s4 + $0x10] sm:$0xff]  }
  0xbd   : > { %vm605_vm4 = vmor %vm445_vm2, %vm573_vm1  ;;  %2557 = vmatprep.subr.bf16.mxu0 %v2756_v33  ;;  %2595 = vmatprep.subr.bf16.mxu1 %v2775_v35 }
  0xbe   : > { %vm2317_vm6 = vmpackc.low %vm605_vm4, %vm604_vm0  ;;  %2596 = vmatpush3.bf16.msra.mxu1 %v2775_v35 }
  0xbf   : > { %v364_v37 = vpop.permute.xlu0 %363  ;;  %2527 = vmatprep.mubr.msk.bf16.mxu0 %vm2317_vm6, %v2791_v31  ;;  %v498_v38 = vpop.permute.xlu1 %497 }
  0xc0   : > { %vm446_vm9 = vcmp.eq.s32.totalorder %v2983_v23, %v364_v37  ;;  %2744 = vset.pattern.permute.xlu1 %v2789_v0  ;;  %2558 = vmatpush3.bf16.msra.mxu0 %v2756_v33  ;;  %vm576_vm11 = vcmp.eq.s32.totalorder %v2983_v23, %v498_v38  ;;  %v2771_v33 = vld [vmem:[%s2877_s9 + $0x70] sm:$0xff]   ;;  %v2777_v37 = vld [vmem:[%s3396_s4 + $0x20] sm:$0xff]  }
  0xc1   : > { %vm606_vm10 = vmor %vm446_vm9, %vm574_vm5  ;;  %438 = vperm.xlu1 %2744, %v311_v36   ;;  %v2776_v36 = vld [vmem:[%s3396_s4 + $0x18] sm:$0xff]  }
  0xc2   : > { %vm2319_vm12 = vmpackc.low %vm607_vm8, %vm606_vm10  ;;  %2597 = vmatprep.subr.bf16.mxu1 %v2776_v36 }
  0xc3   : > { %v373_v40 = vpop.permute.xlu0 %372  ;;  %2528 = vmatmul.mubr.msk.bf16.gmra.mrb[4].mxu0 %vm2319_vm12, %v2791_v31  ;;  %v501_v41 = vpop.permute.xlu1 %500  ;;  %vm608_vm14 = vmor %vm448_vm13, %vm576_vm11  ;;  %2598 = vmatpush3.bf16.msra.mxu1 %v2776_v36 }
  0xc4   : > { %vm449_vm15 = vcmp.eq.s32.totalorder %v2983_v23, %v373_v40  ;;  %vm577_vm0 = vcmp.eq.s32.totalorder %v2983_v23, %v501_v41  ;;  %2631 = vmatprep.subr.bf16.mxu1 %v2777_v37 }
  0xc5   : > { %vm609_vm1 = vmor %vm449_vm15, %vm577_vm0  ;;  %2746 = vset.pattern.permute.xlu1 %v2790_v1 }
  0xc6   : > { %vm2321_vm2 = vmpackc.low %vm609_vm1, %vm608_vm14  ;;  %566 = vperm.xlu1 %2746, %v343_v39   ;;  %vm582_vm1 = vcmp.eq.s32.totalorder %v2983_v23, %v2971_v12 }
  0xc7   : > { %2531 = vmatprep.mubr.msk.bf16.mxu0 %vm2321_vm2, %v2791_v31  ;;  %v376_v42 = vpop.permute.xlu0 %375 }
  0xc8   : > { %v379_v0 = vpop.permute.xlu1 %378  ;;  %vm450_vm4 = vcmp.eq.s32.totalorder %v2983_v23, %v376_v42 }
  0xc9   : > { %vm610_vm5 = vmor %vm450_vm4, %vm578_vm3  ;;  %vm451_vm6 = vcmp.eq.s32.totalorder %v2983_v23, %v379_v0 }
  0xcb   : > { %v385_v45 = vpop.permute.xlu0 %384 }
  0xcc   : > { %vm453_vm11 = vcmp.eq.s32.totalorder %v2983_v23, %v385_v45 }
  0xcd   : > { %v507_v43 = vpop.permute.xlu1 %506 }
  0xce   : > { %vm579_vm7 = vcmp.eq.s32.totalorder %v2983_v23, %v507_v43 }
  0xcf   : > { %vm611_vm8 = vmor %vm451_vm6, %vm579_vm7  ;;  %v388_v48 = vpop.permute.xlu0 %387 }
  0xd0   : > { %vm2323_vm9 = vmpackc.low %vm611_vm8, %vm610_vm5  ;;  %vm454_vm2 = vcmp.eq.s32.totalorder %v2983_v23, %v388_v48 }
  0xd1   : > { %2532 = vmatmul.mubr.msk.bf16.gmra.mrb[8].mxu0 %vm2323_vm9, %v2791_v31  ;;  %vm614_vm3 = vmor %vm454_vm2, %vm582_vm1 }
  0xd2   : > { %v382_v1 = vpop.permute.xlu1 %381 }
  0xd3   : > { %vm452_vm12 = vcmp.eq.s32.totalorder %v2983_v23, %v382_v1  ;;  %v397_v52 = vpop.permute.xlu0 %396 }
  0xd4   : > { %vm457_vm9 = vcmp.eq.s32.totalorder %v2983_v23, %v397_v52 }
  0xd7   : > { %v510_v44 = vpop.permute.xlu1 %509  ;;  %v400_v55 = vpop.permute.xlu0 %399 }
  0xd8   : > { %vm580_vm10 = vcmp.eq.s32.totalorder %v2983_v23, %v510_v44 }
  0xd9   : > { %vm612_vm13 = vmor %vm452_vm12, %vm580_vm10 }
  0xdb   : > { %v513_v46 = vpop.permute.xlu1 %512  ;;  %v409_v61 = vpop.permute.xlu0 %408 }
  0xdc   : > { %vm581_vm14 = vcmp.eq.s32.totalorder %v2983_v23, %v513_v46 }
  0xdd   : > { %vm613_vm15 = vmor %vm453_vm11, %vm581_vm14 }
  0xde   : > { %vm2325_vm0 = vmpackc.low %vm613_vm15, %vm612_vm13  ;;  %vm586_vm15 = vcmp.eq.s32.totalorder %v2983_v23, %v2974_v15 }
  0xdf   : > { %2535 = vmatprep.mubr.msk.bf16.mxu0 %vm2325_vm0, %v2791_v31  ;;  %vm458_vm0 = vcmp.eq.s32.totalorder %v2983_v23, %v400_v55  ;;  %v412_v2 = vpop.permute.xlu0 %411 }
  0xe0   : > { %v391_v47 = vpop.permute.xlu1 %390  ;;  %vm618_vm1 = vmor %vm458_vm0, %vm586_vm15 }
  0xe1   : > { %vm455_vm4 = vcmp.eq.s32.totalorder %v2983_v23, %v391_v47 }
  0xe3   : > { %v421_v6 = vpop.permute.xlu0 %420 }
  0xe5   : > { %v519_v49 = vpop.permute.xlu1 %518 }
  0xe6   : > { %vm583_vm5 = vcmp.eq.s32.totalorder %v2983_v23, %v519_v49 }
  0xe7   : > { %vm615_vm6 = vmor %vm455_vm4, %vm583_vm5  ;;  %v424_v8 = vpop.permute.xlu0 %423 }
  0xe8   : > { %vm2327_vm7 = vmpackc.low %vm615_vm6, %vm614_vm3 }
  0xe9   : > { %2536 = vmatmul.mubr.msk.bf16.gmra.mrb[12].mxu0 %vm2327_vm7, %v2791_v31 }
  0xea   : > { %v394_v50 = vpop.permute.xlu1 %393 }
  0xeb   : > { %vm456_vm10 = vcmp.eq.s32.totalorder %v2983_v23, %v394_v50  ;;  %v433_v12 = vpop.permute.xlu0 %432 }
  0xef   : > { %v522_v51 = vpop.permute.xlu1 %521  ;;  %v436_v14 = vpop.permute.xlu0 %435 }
  0xf0   : > { %vm584_vm8 = vcmp.eq.s32.totalorder %v2983_v23, %v522_v51  ;;  %v2778_v51 = vld [vmem:[%s3396_s4 + $0x28] sm:$0xff]  }
  0xf1   : > { %vm616_vm11 = vmor %vm456_vm10, %vm584_vm8  ;;  %vm461_vm8 = vcmp.eq.s32.totalorder %v2983_v23, %v409_v61 }
  0xf3   : > { %v525_v53 = vpop.permute.xlu1 %524 }
  0xf4   : > { %vm585_vm12 = vcmp.eq.s32.totalorder %v2983_v23, %v525_v53 }
  0xf5   : > { %vm617_vm13 = vmor %vm457_vm9, %vm585_vm12 }
  0xf6   : > { %vm2329_vm14 = vmpackc.low %vm617_vm13, %vm616_vm11  ;;  %vm590_vm13 = vcmp.eq.s32.totalorder %v2983_v23, %v2976_v16  ;;  %v564_v16 = vpop.permute.xlu0 %563 }
  0xf7   : > { %2539 = vmatprep.mubr.msk.bf16.mxu0 %vm2329_vm14, %v2791_v31  ;;  %vm462_vm14 = vcmp.eq.s32.totalorder %v2983_v23, %v412_v2 }
  0xf8   : > { %v403_v54 = vpop.permute.xlu1 %402  ;;  %vm622_vm15 = vmor %vm462_vm14, %vm590_vm13 }
  0xf9   : > { %vm459_vm2 = vcmp.eq.s32.totalorder %v2983_v23, %v403_v54 }
  0xfd   : > { %v531_v56 = vpop.permute.xlu1 %530 }
  0xfe   : > { %vm587_vm3 = vcmp.eq.s32.totalorder %v2983_v23, %v531_v56 }
  0xff   : > { %vm619_vm4 = vmor %vm459_vm2, %vm587_vm3 }
 0x100   : > { %vm2331_vm5 = vmpackc.low %vm619_vm4, %vm618_vm1 }
 0x101   : > { %2540 = vmatmul.mubr.msk.bf16.gmra.mrb[16].mxu0 %vm2331_vm5, %v2791_v31 }
 0x102   : > { %v406_v57 = vpop.permute.xlu1 %405 }
 0x103   : > { %vm460_vm7 = vcmp.eq.s32.totalorder %v2983_v23, %v406_v57 }
 0x107   : > { %v534_v58 = vpop.permute.xlu1 %533 }
 0x108   : > { %vm588_vm6 = vcmp.eq.s32.totalorder %v2983_v23, %v534_v58 }
 0x109   : > { %vm620_vm9 = vmor %vm460_vm7, %vm588_vm6  ;;  %vm465_vm6 = vcmp.eq.s32.totalorder %v2983_v23, %v421_v6 }
 0x10b   : > { %v537_v62 = vpop.permute.xlu1 %536 }
 0x10c   : > { %vm589_vm10 = vcmp.eq.s32.totalorder %v2983_v23, %v537_v62 }
 0x10d   : > { %vm621_vm11 = vmor %vm461_vm8, %vm589_vm10 }
 0x10e   : > { %vm2333_vm12 = vmpackc.low %vm621_vm11, %vm620_vm9  ;;  %vm466_vm11 = vcmp.eq.s32.totalorder %v2983_v23, %v424_v8 }
 0x10f   : > { %2543 = vmatprep.mubr.msk.bf16.mxu0 %vm2333_vm12, %v2791_v31  ;;  %vm594_vm12 = vcmp.eq.s32.totalorder %v2983_v23, %v2980_v20  ;;  %v2758_v20 = vld [vmem:[%s2877_s9 + $0x8] sm:$0xff]  }
 0x110   : > { %v415_v63 = vpop.permute.xlu1 %414  ;;  %vm626_vm13 = vmor %vm466_vm11, %vm594_vm12 }
 0x111   : > { %vm463_vm0 = vcmp.eq.s32.totalorder %v2983_v23, %v415_v63 }
 0x115   : > { %v543_v3 = vpop.permute.xlu1 %542 }
 0x116   : > { %vm591_vm1 = vcmp.eq.s32.totalorder %v2983_v23, %v543_v3 }
 0x117   : > { %vm623_vm2 = vmor %vm463_vm0, %vm591_vm1 }
 0x118   : > { %vm2335_vm3 = vmpackc.low %vm623_vm2, %vm622_vm15 }
 0x119   : > { %2544 = vmatmul.mubr.msk.bf16.gmra.mrb[20].mxu0 %vm2335_vm3, %v2791_v31 }
 0x11a   : > { %v418_v4 = vpop.permute.xlu1 %417 }
 0x11b   : > { %vm464_vm5 = vcmp.eq.s32.totalorder %v2983_v23, %v418_v4 }
 0x11f   : > { %v546_v5 = vpop.permute.xlu1 %545 }
 0x120   : > { %vm592_vm4 = vcmp.eq.s32.totalorder %v2983_v23, %v546_v5  ;;  %v2780_v5 = vld [vmem:[%s3396_s4 + $0x38] sm:$0xff]  }
 0x121   : > { %vm624_vm7 = vmor %vm464_vm5, %vm592_vm4  ;;  %vm469_vm4 = vcmp.eq.s32.totalorder %v2983_v23, %v433_v12 }
 0x123   : > { %v549_v7 = vpop.permute.xlu1 %548 }
 0x124   : > { %vm593_vm8 = vcmp.eq.s32.totalorder %v2983_v23, %v549_v7 }
 0x125   : > { %vm625_vm9 = vmor %vm465_vm6, %vm593_vm8 }
 0x126   : > { %vm2337_vm10 = vmpackc.low %vm625_vm9, %vm624_vm7  ;;  %vm470_vm9 = vcmp.eq.s32.totalorder %v2983_v23, %v436_v14 }
 0x127   : > { %2547 = vmatprep.mubr.msk.bf16.mxu0 %vm2337_vm10, %v2791_v31  ;;  %vm598_vm10 = vcmp.eq.s32.totalorder %v2983_v23, %v564_v16 }
 0x128   : > { %v427_v9 = vpop.permute.xlu1 %426  ;;  %vm630_vm11 = vmor %vm470_vm9, %vm598_vm10 }
 0x129   : > { %vm467_vm14 = vcmp.eq.s32.totalorder %v2983_v23, %v427_v9 }
 0x12d   : > { %v555_v10 = vpop.permute.xlu1 %554 }
 0x12e   : > { %vm595_vm15 = vcmp.eq.s32.totalorder %v2983_v23, %v555_v10 }
 0x12f   : > { %vm627_vm0 = vmor %vm467_vm14, %vm595_vm15  ;;  %vm1065_vm15 = vcmask 261120  }
 0x130   : > { %vm2339_vm1 = vmpackc.low %vm627_vm0, %vm626_vm13 }
 0x131   : > { %2548 = vmatmul.mubr.msk.bf16.gmra.mrb[24].mxu0 %vm2339_vm1, %v2791_v31 }
 0x132   : > { %v430_v11 = vpop.permute.xlu1 %429 }
 0x133   : > { %vm468_vm3 = vcmp.eq.s32.totalorder %v2983_v23, %v430_v11 }
 0x137   : > { %v558_v13 = vpop.permute.xlu1 %557 }
 0x138   : > { %vm596_vm2 = vcmp.eq.s32.totalorder %v2983_v23, %v558_v13 }
 0x139   : > { %vm628_vm5 = vmor %vm468_vm3, %vm596_vm2 }
 0x13b   : > { %v561_v15 = vpop.permute.xlu1 %560 }
 0x13c   : > { %vm597_vm6 = vcmp.eq.s32.totalorder %v2983_v23, %v561_v15 }
 0x13d   : > { %vm629_vm7 = vmor %vm469_vm4, %vm597_vm6 }
 0x13e   : > { %vm2341_vm8 = vmpackc.low %vm629_vm7, %vm628_vm5  ;;  %vm1432_vm5 = vcmask 523264  }
 0x13f   : > { %2551 = vmatprep.mubr.msk.bf16.mxu0 %vm2341_vm8, %v2791_v31 }
 0x140   : > { %v439_v17 = vpop.permute.xlu1 %438 }
 0x141   : > { %vm471_vm12 = vcmp.eq.s32.totalorder %v2983_v23, %v439_v17 }
 0x145   : > { %v567_v18 = vpop.permute.xlu1 %566 }
 0x146   : > { %vm599_vm13 = vcmp.eq.s32.totalorder %v2983_v23, %v567_v18  ;;  %v2761_v23 = vld [vmem:[%s2877_s9 + $0x20] sm:$0xff]  }
 0x147   : > { %vm631_vm14 = vmor %vm471_vm12, %vm599_vm13 }
 0x148   : > { %vm2343_vm0 = vmpackc.low %vm631_vm14, %vm630_vm11 }
 0x149   : > { %2552 = vmatmul.mubr.msk.bf16.gmra.mrb[28].mxu0 %vm2343_vm0, %v2791_v31  ;;  %v2769_v31 = vld [vmem:[%s2877_s9 + $0x60] sm:$0xff]  }
 0x14a   : > { %2559 = vmatprep.mubr.msk.bf16.mxu0 %vm1065_vm15, %v2757_v19 }
 0x151   : > { %2560 = vmatmul.mubr.msk.bf16.vlgmr.msra.gmra.mrb[0].mxu0 %vm1065_vm15, %v2758_v20 }
 0x152   : > { %2563 = vmatprep.mubr.msk.bf16.mxu0 %vm1065_vm15, %v2759_v21 }
 0x159   : > { %2564 = vmatmul.mubr.msk.bf16.gmra.mrb[4].mxu0 %vm1065_vm15, %v2760_v22 }
 0x15a   : > { %2567 = vmatprep.mubr.msk.bf16.mxu0 %vm1065_vm15, %v2761_v23 }
 0x161   : > { %2568 = vmatmul.mubr.msk.bf16.gmra.mrb[8].mxu0 %vm1065_vm15, %v2762_v24 }
 0x162   : > { %2571 = vmatprep.mubr.msk.bf16.mxu0 %vm1065_vm15, %v2763_v25 }
 0x169   : > { %2572 = vmatmul.mubr.msk.bf16.gmra.mrb[12].mxu0 %vm1065_vm15, %v2764_v26 }
 0x16a   : > { %2575 = vmatprep.mubr.msk.bf16.mxu0 %vm1065_vm15, %v2765_v27 }
 0x171   : > { %2576 = vmatmul.mubr.msk.bf16.gmra.mrb[16].mxu0 %vm1065_vm15, %v2766_v28 }
 0x172   : > { %2579 = vmatprep.mubr.msk.bf16.mxu0 %vm1065_vm15, %v2767_v29 }
 0x179   : > { %2580 = vmatmul.mubr.msk.bf16.gmra.mrb[20].mxu0 %vm1065_vm15, %v2768_v30 }
 0x17a   : > { %2583 = vmatprep.mubr.msk.bf16.mxu0 %vm1065_vm15, %v2769_v31 }
 0x181   : > { %2584 = vmatmul.mubr.msk.bf16.gmra.mrb[24].mxu0 %vm1065_vm15, %v2770_v32 }
 0x182   : > { %2587 = vmatprep.mubr.msk.bf16.mxu0 %vm1065_vm15, %v2771_v33 }
 0x189   : > { %2588 = vmatmul.mubr.msk.bf16.gmra.mrb[28].mxu0 %vm1065_vm15, %v2772_v34 }
 0x224   : > { %v2561_v38 = vpop.f32.mrb[0].mxu0 }
 0x225   : > { %v1309_v39 = vmul.f32 0.01, %v2561_v38  ;;  %v1148_v40 = vpop.f32.mrb[1].mxu0  ;;  %vm1277_vm1 = vcmp.gt.f32.partialorder %v2561_v38, 0.0 }
 0x226   : > { %v1307_v41 = vmul.f32 0.01, %v1148_v40  ;;  %v2562_v0 = vpop.f32.mrb[2].mxu0  ;;  %vm1275_vm2 = vcmp.gt.f32.partialorder %v1148_v40, 0.0 }
 0x227   : > { %vm1278_vm3 = vcmp.gt.f32.partialorder %v2562_v0, 0.0  ;;  %v1310_v42 = vmul.f32 0.01, %v2562_v0  ;;  %v1151_v43 = vpop.f32.mrb[3].mxu0  ;;  %v1341_v44 = vsel %vm1277_vm1, %v2561_v38, %v1309_v39 }
 0x228   : > { %vm1276_vm4 = vcmp.gt.f32.partialorder %v1151_v43, 0.0  ;;  %v1308_v1 = vmul.f32 0.01, %v1151_v43  ;;  %v1339_v47 = vsel %vm1275_vm2, %v1148_v40, %v1307_v41 }
 0x229   : > { %v1342_v45 = vsel %vm1278_vm3, %v2562_v0, %v1310_v42 }
 0x22a   : > { %v1388_v46 = vpack.c.bf16 %v1342_v45, %v1341_v44  ;;  %v1340_v48 = vsel %vm1276_vm4, %v1151_v43, %v1308_v1 }
 0x22b   : > { %v1387_v49 = vpack.c.bf16 %v1340_v48, %v1339_v47 }
 0x22c   : > { %v2565_v50 = vpop.f32.mrb[4].mxu0 }
 0x22d   : > { %v1313_v52 = vmul.f32 0.01, %v2565_v50  ;;  %v1164_v53 = vpop.f32.mrb[5].mxu0  ;;  %2599 = vmatprep.mubr.msk.bf16.mxu1 %vm1432_vm5, %v1387_v49  ;;  %vm1281_vm6 = vcmp.gt.f32.partialorder %v2565_v50, 0.0 }
 0x22e   : > { %v1311_v54 = vmul.f32 0.01, %v1164_v53  ;;  %v2566_v55 = vpop.f32.mrb[6].mxu0  ;;  %2600 = vmatmul.mubr.msk.bf16.vlgmr.msra.gmra.mrb[0].mxu1 %vm1432_vm5, %v1388_v46  ;;  %vm1279_vm7 = vcmp.gt.f32.partialorder %v1164_v53, 0.0 }
 0x22f   : > { %vm1282_vm8 = vcmp.gt.f32.partialorder %v2566_v55, 0.0  ;;  %v1314_v56 = vmul.f32 0.01, %v2566_v55  ;;  %v1167_v57 = vpop.f32.mrb[7].mxu0  ;;  %2632 = vmatpush3.bf16.msra.mxu1 %v2777_v37  ;;  %v1345_v60 = vsel %vm1281_vm6, %v2565_v50, %v1313_v52 }
 0x230   : > { %vm1280_vm9 = vcmp.gt.f32.partialorder %v1167_v57, 0.0  ;;  %v1312_v58 = vmul.f32 0.01, %v1167_v57  ;;  %2633 = vmatprep.subr.bf16.mxu1 %v2778_v51  ;;  %v1343_v62 = vsel %vm1279_vm7, %v1164_v53, %v1311_v54 }
 0x231   : > { %v1346_v61 = vsel %vm1282_vm8, %v2566_v55, %v1314_v56 }
 0x232   : > { %v1390_v63 = vpack.c.bf16 %v1346_v61, %v1345_v60  ;;  %v1344_v2 = vsel %vm1280_vm9, %v1167_v57, %v1312_v58 }
 0x233   : > { %v1389_v3 = vpack.c.bf16 %v1344_v2, %v1343_v62  ;;  %2634 = vmatpush3.bf16.msra.mxu1 %v2778_v51 }
 0x234   : > { %v2569_v4 = vpop.f32.mrb[8].mxu0  ;;  %2635 = vmatprep.subr.bf16.mxu1 %v2779_v59 }
 0x235   : > { %v1317_v6 = vmul.f32 0.01, %v2569_v4  ;;  %v1180_v7 = vpop.f32.mrb[9].mxu0  ;;  %2603 = vmatprep.mubr.msk.bf16.mxu1 %vm1432_vm5, %v1389_v3  ;;  %vm1285_vm10 = vcmp.gt.f32.partialorder %v2569_v4, 0.0 }
 0x236   : > { %v1315_v8 = vmul.f32 0.01, %v1180_v7  ;;  %v2570_v9 = vpop.f32.mrb[10].mxu0  ;;  %2604 = vmatmul.mubr.msk.bf16.gmra.mrb[4].mxu1 %vm1432_vm5, %v1390_v63  ;;  %vm1283_vm11 = vcmp.gt.f32.partialorder %v1180_v7, 0.0 }
 0x237   : > { %vm1286_vm12 = vcmp.gt.f32.partialorder %v2570_v9, 0.0  ;;  %v1318_v10 = vmul.f32 0.01, %v2570_v9  ;;  %v1183_v11 = vpop.f32.mrb[11].mxu0  ;;  %2636 = vmatpush3.bf16.msra.mxu1 %v2779_v59  ;;  %v1349_v13 = vsel %vm1285_vm10, %v2569_v4, %v1317_v6 }
 0x238   : > { %vm1284_vm13 = vcmp.gt.f32.partialorder %v1183_v11, 0.0  ;;  %v1316_v12 = vmul.f32 0.01, %v1183_v11  ;;  %2637 = vmatprep.subr.bf16.mxu1 %v2780_v5  ;;  %v1347_v15 = vsel %vm1283_vm11, %v1180_v7, %v1315_v8 }
 0x239   : > { %v1350_v14 = vsel %vm1286_vm12, %v2570_v9, %v1318_v10 }
 0x23a   : > { %v1392_v16 = vpack.c.bf16 %v1350_v14, %v1349_v13  ;;  %v1348_v17 = vsel %vm1284_vm13, %v1183_v11, %v1316_v12 }
 0x23b   : > { %v1391_v18 = vpack.c.bf16 %v1348_v17, %v1347_v15  ;;  %2638 = vmatpush3.bf16.msra.mxu1 %v2780_v5 }
 0x23c   : > { %v2573_v19 = vpop.f32.mrb[12].mxu0 }
 0x23d   : > { %v1321_v20 = vmul.f32 0.01, %v2573_v19  ;;  %v1196_v21 = vpop.f32.mrb[13].mxu0  ;;  %2607 = vmatprep.mubr.msk.bf16.mxu1 %vm1432_vm5, %v1391_v18  ;;  %vm1289_vm14 = vcmp.gt.f32.partialorder %v2573_v19, 0.0 }
 0x23e   : > { %v1319_v22 = vmul.f32 0.01, %v1196_v21  ;;  %v2574_v23 = vpop.f32.mrb[14].mxu0  ;;  %2608 = vmatmul.mubr.msk.bf16.gmra.mrb[8].mxu1 %vm1432_vm5, %v1392_v16  ;;  %vm1287_vm15 = vcmp.gt.f32.partialorder %v1196_v21, 0.0 }
 0x23f   : > { %vm1290_vm0 = vcmp.gt.f32.partialorder %v2574_v23, 0.0  ;;  %v1322_v24 = vmul.f32 0.01, %v2574_v23  ;;  %v1199_v25 = vpop.f32.mrb[15].mxu0  ;;  %v1353_v27 = vsel %vm1289_vm14, %v2573_v19, %v1321_v20 }
 0x240   : > { %vm1288_vm1 = vcmp.gt.f32.partialorder %v1199_v25, 0.0  ;;  %v1320_v26 = vmul.f32 0.01, %v1199_v25  ;;  %v1351_v29 = vsel %vm1287_vm15, %v1196_v21, %v1319_v22 }
 0x241   : > { %v1354_v28 = vsel %vm1290_vm0, %v2574_v23, %v1322_v24 }
 0x242   : > { %v1394_v30 = vpack.c.bf16 %v1354_v28, %v1353_v27  ;;  %v1352_v31 = vsel %vm1288_vm1, %v1199_v25, %v1320_v26  ;;  %v3157_v25 = vld [vmem:[%s3397_s5] ss:$0 sm:$0xff] }
 0x243   : > { %v1393_v32 = vpack.c.bf16 %v1352_v31, %v1351_v29 }
 0x244   : > { %v2577_v33 = vpop.f32.mrb[16].mxu0 }
 0x245   : > { %v1325_v34 = vmul.f32 0.01, %v2577_v33  ;;  %v1212_v35 = vpop.f32.mrb[17].mxu0  ;;  %2611 = vmatprep.mubr.msk.bf16.mxu1 %vm1432_vm5, %v1393_v32  ;;  %vm1293_vm2 = vcmp.gt.f32.partialorder %v2577_v33, 0.0 }
 0x246   : > { %v1323_v36 = vmul.f32 0.01, %v1212_v35  ;;  %v2578_v37 = vpop.f32.mrb[18].mxu0  ;;  %2612 = vmatmul.mubr.msk.bf16.gmra.mrb[12].mxu1 %vm1432_vm5, %v1394_v30  ;;  %vm1291_vm3 = vcmp.gt.f32.partialorder %v1212_v35, 0.0 }
 0x247   : > { %vm1294_vm4 = vcmp.gt.f32.partialorder %v2578_v37, 0.0  ;;  %v1326_v38 = vmul.f32 0.01, %v2578_v37  ;;  %v1215_v39 = vpop.f32.mrb[19].mxu0  ;;  %v1357_v41 = vsel %vm1293_vm2, %v2577_v33, %v1325_v34 }
 0x248   : > { %vm1292_vm6 = vcmp.gt.f32.partialorder %v1215_v39, 0.0  ;;  %v1324_v40 = vmul.f32 0.01, %v1215_v39  ;;  %v1355_v42 = vsel %vm1291_vm3, %v1212_v35, %v1323_v36 }
 0x249   : > { %v1358_v0 = vsel %vm1294_vm4, %v2578_v37, %v1326_v38 }
 0x24a   : > { %v1396_v43 = vpack.c.bf16 %v1358_v0, %v1357_v41  ;;  %v1356_v1 = vsel %vm1292_vm6, %v1215_v39, %v1324_v40 }
 0x24b   : > { %v1395_v44 = vpack.c.bf16 %v1356_v1, %v1355_v42 }
 0x24c   : > { %v2581_v45 = vpop.f32.mrb[20].mxu0 }
 0x24d   : > { %v1329_v46 = vmul.f32 0.01, %v2581_v45  ;;  %v1228_v47 = vpop.f32.mrb[21].mxu0  ;;  %2615 = vmatprep.mubr.msk.bf16.mxu1 %vm1432_vm5, %v1395_v44  ;;  %vm1297_vm7 = vcmp.gt.f32.partialorder %v2581_v45, 0.0 }
 0x24e   : > { %v1327_v48 = vmul.f32 0.01, %v1228_v47  ;;  %v2582_v49 = vpop.f32.mrb[22].mxu0  ;;  %2616 = vmatmul.mubr.msk.bf16.gmra.mrb[16].mxu1 %vm1432_vm5, %v1396_v43  ;;  %vm1295_vm8 = vcmp.gt.f32.partialorder %v1228_v47, 0.0 }
 0x24f   : > { %vm1298_vm9 = vcmp.gt.f32.partialorder %v2582_v49, 0.0  ;;  %v1330_v50 = vmul.f32 0.01, %v2582_v49  ;;  %v1231_v51 = vpop.f32.mrb[23].mxu0  ;;  %v1361_v53 = vsel %vm1297_vm7, %v2581_v45, %v1329_v46 }
 0x250   : > { %vm1296_vm10 = vcmp.gt.f32.partialorder %v1231_v51, 0.0  ;;  %v1328_v52 = vmul.f32 0.01, %v1231_v51  ;;  %v1359_v55 = vsel %vm1295_vm8, %v1228_v47, %v1327_v48 }
 0x251   : > { %v1362_v54 = vsel %vm1298_vm9, %v2582_v49, %v1330_v50 }
 0x252   : > { %v1398_v56 = vpack.c.bf16 %v1362_v54, %v1361_v53  ;;  %v1360_v57 = vsel %vm1296_vm10, %v1231_v51, %v1328_v52 }
 0x253   : > { %v1397_v58 = vpack.c.bf16 %v1360_v57, %v1359_v55 }
 0x254   : > { %v2585_v59 = vpop.f32.mrb[24].mxu0 }
 0x255   : > { %v1333_v60 = vmul.f32 0.01, %v2585_v59  ;;  %v1244_v61 = vpop.f32.mrb[25].mxu0  ;;  %2619 = vmatprep.mubr.msk.bf16.mxu1 %vm1432_vm5, %v1397_v58  ;;  %vm1301_vm11 = vcmp.gt.f32.partialorder %v2585_v59, 0.0 }
 0x256   : > { %v1331_v62 = vmul.f32 0.01, %v1244_v61  ;;  %v2586_v63 = vpop.f32.mrb[26].mxu0  ;;  %2620 = vmatmul.mubr.msk.bf16.gmra.mrb[20].mxu1 %vm1432_vm5, %v1398_v56  ;;  %vm1299_vm12 = vcmp.gt.f32.partialorder %v1244_v61, 0.0 }
 0x257   : > { %vm1302_vm13 = vcmp.gt.f32.partialorder %v2586_v63, 0.0  ;;  %v1334_v2 = vmul.f32 0.01, %v2586_v63  ;;  %v1247_v3 = vpop.f32.mrb[27].mxu0  ;;  %v1365_v5 = vsel %vm1301_vm11, %v2585_v59, %v1333_v60 }
 0x258   : > { %vm1300_vm14 = vcmp.gt.f32.partialorder %v1247_v3, 0.0  ;;  %v1332_v4 = vmul.f32 0.01, %v1247_v3  ;;  %v1363_v7 = vsel %vm1299_vm12, %v1244_v61, %v1331_v62 }
 0x259   : > { %v1366_v6 = vsel %vm1302_vm13, %v2586_v63, %v1334_v2 }
 0x25a   : > { %v1400_v8 = vpack.c.bf16 %v1366_v6, %v1365_v5  ;;  %v1364_v9 = vsel %vm1300_vm14, %v1247_v3, %v1332_v4 }
 0x25b   : > { %v1399_v10 = vpack.c.bf16 %v1364_v9, %v1363_v7 }
 0x25c   : > { %v2589_v11 = vpop.f32.mrb[28].mxu0 }
 0x25d   : > { %v1337_v12 = vmul.f32 0.01, %v2589_v11  ;;  %v1260_v13 = vpop.f32.mrb[29].mxu0  ;;  %2623 = vmatprep.mubr.msk.bf16.mxu1 %vm1432_vm5, %v1399_v10  ;;  %vm1305_vm15 = vcmp.gt.f32.partialorder %v2589_v11, 0.0 }
 0x25e   : > { %v1335_v14 = vmul.f32 0.01, %v1260_v13  ;;  %v2590_v15 = vpop.f32.mrb[30].mxu0  ;;  %2624 = vmatmul.mubr.msk.bf16.gmra.mrb[24].mxu1 %vm1432_vm5, %v1400_v8  ;;  %vm1303_vm0 = vcmp.gt.f32.partialorder %v1260_v13, 0.0 }
 0x25f   : > { %vm1306_vm1 = vcmp.gt.f32.partialorder %v2590_v15, 0.0  ;;  %v1338_v16 = vmul.f32 0.01, %v2590_v15  ;;  %v1263_v17 = vpop.f32.mrb[31].mxu0  ;;  %v1369_v19 = vsel %vm1305_vm15, %v2589_v11, %v1337_v12 }
 0x260   : > { %vm1304_vm2 = vcmp.gt.f32.partialorder %v1263_v17, 0.0  ;;  %v1336_v18 = vmul.f32 0.01, %v1263_v17  ;;  %v1367_v21 = vsel %vm1303_vm0, %v1260_v13, %v1335_v14 }
 0x261   : > { %v1370_v20 = vsel %vm1306_vm1, %v2590_v15, %v1338_v16 }
 0x262   : > { %v1402_v22 = vpack.c.bf16 %v1370_v20, %v1369_v19  ;;  %v1368_v23 = vsel %vm1304_vm2, %v1263_v17, %v1336_v18 }
 0x263   : > { %v1401_v24 = vpack.c.bf16 %v1368_v23, %v1367_v21 }
 0x265   : > { %2627 = vmatprep.mubr.msk.bf16.mxu1 %vm1432_vm5, %v1401_v24 }
 0x266   : > { %2628 = vmatmul.mubr.msk.bf16.gmra.mrb[28].mxu1 %vm1432_vm5, %v1402_v22 }
 0x301   : > { %v2601_v26 = vpop.f32.mrb[0].mxu1 }
 0x302   : > { %v1524_v27 = vadd.f32 %v2601_v26, %v3157_v25  ;;  %v1515_v28 = vpop.f32.mrb[1].mxu1 }
 0x303   : > { %v1516_v29 = vadd.f32 %v3157_v25, %v1515_v28  ;;  %v2602_v30 = vpop.f32.mrb[2].mxu1 }
 0x304   : > { %v1676_v31 = vmul.f32 0.01, %v1524_v27  ;;  %v1527_v32 = vadd.f32 %v2602_v30, %v3157_v25  ;;  %v1518_v33 = vpop.f32.mrb[3].mxu1  ;;  %vm1644_vm3 = vcmp.gt.f32.partialorder %v1524_v27, 0.0 }
 0x305   : > { %v1674_v34 = vmul.f32 0.01, %v1516_v29  ;;  %v1519_v35 = vadd.f32 %v3157_v25, %v1518_v33  ;;  %vm1642_vm4 = vcmp.gt.f32.partialorder %v1516_v29, 0.0 }
 0x306   : > { %vm1645_vm6 = vcmp.gt.f32.partialorder %v1527_v32, 0.0  ;;  %v1677_v36 = vmul.f32 0.01, %v1527_v32  ;;  %v1708_v38 = vsel %vm1644_vm3, %v1524_v27, %v1676_v31 }
 0x307   : > { %vm1643_vm7 = vcmp.gt.f32.partialorder %v1519_v35, 0.0  ;;  %v1675_v37 = vmul.f32 0.01, %v1519_v35  ;;  %v1706_v40 = vsel %vm1642_vm4, %v1516_v29, %v1674_v34 }
 0x308   : > { %v1709_v39 = vsel %vm1645_vm6, %v1527_v32, %v1677_v36 }
 0x309   : > { %v1739_v41 = vpack.c.bf16 %v1709_v39, %v1708_v38  ;;  %v1707_v0 = vsel %vm1643_vm7, %v1519_v35, %v1675_v37  ;;  %v2605_v42 = vpop.f32.mrb[4].mxu1 }
 0x30a   : > { %v1738_v43 = vpack.c.bf16 %v1707_v0, %v1706_v40  ;;  %v1540_v1 = vadd.f32 %v2605_v42, %v3157_v25  ;;  %v1531_v44 = vpop.f32.mrb[5].mxu1 }
 0x30b   : > { %v1532_v45 = vadd.f32 %v3157_v25, %v1531_v44  ;;  %v2606_v46 = vpop.f32.mrb[6].mxu1 }
 0x30c   : > { %v1680_v47 = vmul.f32 0.01, %v1540_v1  ;;  %v1543_v48 = vadd.f32 %v2606_v46, %v3157_v25  ;;  %v1534_v49 = vpop.f32.mrb[7].mxu1  ;;  %2639 = vmatprep.mubr.msk.bf16.mxu1 %vm1432_vm5, %v1738_v43  ;;  %vm1648_vm8 = vcmp.gt.f32.partialorder %v1540_v1, 0.0 }
 0x30d   : > { %v1678_v50 = vmul.f32 0.01, %v1532_v45  ;;  %v1535_v51 = vadd.f32 %v3157_v25, %v1534_v49  ;;  %2640 = vmatmul.mubr.msk.bf16.vlgmr.msra.gmra.mrb[32].mxu1 %vm1432_vm5, %v1739_v41  ;;  %vm1646_vm9 = vcmp.gt.f32.partialorder %v1532_v45, 0.0 }
 0x30e   : > { %vm1649_vm10 = vcmp.gt.f32.partialorder %v1543_v48, 0.0  ;;  %v1681_v52 = vmul.f32 0.01, %v1543_v48  ;;  %v1712_v54 = vsel %vm1648_vm8, %v1540_v1, %v1680_v47 }
 0x30f   : > { %vm1647_vm11 = vcmp.gt.f32.partialorder %v1535_v51, 0.0  ;;  %v1679_v53 = vmul.f32 0.01, %v1535_v51  ;;  %v1710_v56 = vsel %vm1646_vm9, %v1532_v45, %v1678_v50 }
 0x310   : > { %v1713_v55 = vsel %vm1649_vm10, %v1543_v48, %v1681_v52 }
 0x311   : > { %v1741_v57 = vpack.c.bf16 %v1713_v55, %v1712_v54  ;;  %v1711_v58 = vsel %vm1647_vm11, %v1535_v51, %v1679_v53  ;;  %v2609_v59 = vpop.f32.mrb[8].mxu1 }
 0x312   : > { %v1740_v60 = vpack.c.bf16 %v1711_v58, %v1710_v56  ;;  %v1556_v61 = vadd.f32 %v2609_v59, %v3157_v25  ;;  %v1547_v62 = vpop.f32.mrb[9].mxu1 }
 0x313   : > { %v1548_v63 = vadd.f32 %v3157_v25, %v1547_v62  ;;  %v2610_v2 = vpop.f32.mrb[10].mxu1 }
 0x314   : > { %v1684_v3 = vmul.f32 0.01, %v1556_v61  ;;  %v1559_v4 = vadd.f32 %v2610_v2, %v3157_v25  ;;  %v1550_v5 = vpop.f32.mrb[11].mxu1  ;;  %2643 = vmatprep.mubr.msk.bf16.mxu1 %vm1432_vm5, %v1740_v60  ;;  %vm1652_vm12 = vcmp.gt.f32.partialorder %v1556_v61, 0.0 }
 0x315   : > { %v1682_v6 = vmul.f32 0.01, %v1548_v63  ;;  %v1551_v7 = vadd.f32 %v3157_v25, %v1550_v5  ;;  %2644 = vmatmul.mubr.msk.bf16.gmra.mrb[36].mxu1 %vm1432_vm5, %v1741_v57  ;;  %vm1650_vm13 = vcmp.gt.f32.partialorder %v1548_v63, 0.0 }
 0x316   : > { %vm1653_vm14 = vcmp.gt.f32.partialorder %v1559_v4, 0.0  ;;  %v1685_v8 = vmul.f32 0.01, %v1559_v4  ;;  %v1716_v10 = vsel %vm1652_vm12, %v1556_v61, %v1684_v3 }
 0x317   : > { %vm1651_vm15 = vcmp.gt.f32.partialorder %v1551_v7, 0.0  ;;  %v1683_v9 = vmul.f32 0.01, %v1551_v7  ;;  %v1714_v12 = vsel %vm1650_vm13, %v1548_v63, %v1682_v6 }
 0x318   : > { %v1717_v11 = vsel %vm1653_vm14, %v1559_v4, %v1685_v8 }
 0x319   : > { %v1743_v13 = vpack.c.bf16 %v1717_v11, %v1716_v10  ;;  %v1715_v14 = vsel %vm1651_vm15, %v1551_v7, %v1683_v9  ;;  %v2613_v15 = vpop.f32.mrb[12].mxu1 }
 0x31a   : > { %v1742_v16 = vpack.c.bf16 %v1715_v14, %v1714_v12  ;;  %v1572_v17 = vadd.f32 %v2613_v15, %v3157_v25  ;;  %v1563_v18 = vpop.f32.mrb[13].mxu1 }
 0x31b   : > { %v1564_v19 = vadd.f32 %v3157_v25, %v1563_v18  ;;  %v2614_v20 = vpop.f32.mrb[14].mxu1 }
 0x31c   : > { %v1688_v21 = vmul.f32 0.01, %v1572_v17  ;;  %v1575_v22 = vadd.f32 %v2614_v20, %v3157_v25  ;;  %v1566_v23 = vpop.f32.mrb[15].mxu1  ;;  %2647 = vmatprep.mubr.msk.bf16.mxu1 %vm1432_vm5, %v1742_v16  ;;  %vm1656_vm0 = vcmp.gt.f32.partialorder %v1572_v17, 0.0 }
 0x31d   : > { %v1686_v24 = vmul.f32 0.01, %v1564_v19  ;;  %v1567_v26 = vadd.f32 %v3157_v25, %v1566_v23  ;;  %2648 = vmatmul.mubr.msk.bf16.gmra.mrb[40].mxu1 %vm1432_vm5, %v1743_v13  ;;  %vm1654_vm1 = vcmp.gt.f32.partialorder %v1564_v19, 0.0 }
 0x31e   : > { %vm1657_vm2 = vcmp.gt.f32.partialorder %v1575_v22, 0.0  ;;  %v1689_v27 = vmul.f32 0.01, %v1575_v22  ;;  %v1720_v29 = vsel %vm1656_vm0, %v1572_v17, %v1688_v21 }
 0x31f   : > { %vm1655_vm3 = vcmp.gt.f32.partialorder %v1567_v26, 0.0  ;;  %v1687_v28 = vmul.f32 0.01, %v1567_v26  ;;  %v1718_v31 = vsel %vm1654_vm1, %v1564_v19, %v1686_v24 }
 0x320   : > { %v1721_v30 = vsel %vm1657_vm2, %v1575_v22, %v1689_v27 }
 0x321   : > { %v1745_v32 = vpack.c.bf16 %v1721_v30, %v1720_v29  ;;  %v1719_v33 = vsel %vm1655_vm3, %v1567_v26, %v1687_v28  ;;  %v2617_v34 = vpop.f32.mrb[16].mxu1 }
 0x322   : > { %v1744_v35 = vpack.c.bf16 %v1719_v33, %v1718_v31  ;;  %v1588_v36 = vadd.f32 %v2617_v34, %v3157_v25  ;;  %v1579_v37 = vpop.f32.mrb[17].mxu1 }
 0x323   : > { %v1580_v38 = vadd.f32 %v3157_v25, %v1579_v37  ;;  %v2618_v39 = vpop.f32.mrb[18].mxu1 }
 0x324   : > { %v1692_v40 = vmul.f32 0.01, %v1588_v36  ;;  %v1591_v41 = vadd.f32 %v2618_v39, %v3157_v25  ;;  %v1582_v0 = vpop.f32.mrb[19].mxu1  ;;  %2651 = vmatprep.mubr.msk.bf16.mxu1 %vm1432_vm5, %v1744_v35  ;;  %vm1660_vm4 = vcmp.gt.f32.partialorder %v1588_v36, 0.0 }
 0x325   : > { %v1690_v42 = vmul.f32 0.01, %v1580_v38  ;;  %v1583_v43 = vadd.f32 %v3157_v25, %v1582_v0  ;;  %2652 = vmatmul.mubr.msk.bf16.gmra.mrb[44].mxu1 %vm1432_vm5, %v1745_v32  ;;  %vm1658_vm6 = vcmp.gt.f32.partialorder %v1580_v38, 0.0 }
 0x326   : > { %vm1661_vm7 = vcmp.gt.f32.partialorder %v1591_v41, 0.0  ;;  %v1693_v1 = vmul.f32 0.01, %v1591_v41  ;;  %v1724_v45 = vsel %vm1660_vm4, %v1588_v36, %v1692_v40 }
 0x327   : > { %vm1659_vm8 = vcmp.gt.f32.partialorder %v1583_v43, 0.0  ;;  %v1691_v44 = vmul.f32 0.01, %v1583_v43  ;;  %v1722_v47 = vsel %vm1658_vm6, %v1580_v38, %v1690_v42 }
 0x328   : > { %v1725_v46 = vsel %vm1661_vm7, %v1591_v41, %v1693_v1 }
 0x329   : > { %v1747_v48 = vpack.c.bf16 %v1725_v46, %v1724_v45  ;;  %v1723_v49 = vsel %vm1659_vm8, %v1583_v43, %v1691_v44  ;;  %v2621_v50 = vpop.f32.mrb[20].mxu1 }
 0x32a   : > { %v1746_v51 = vpack.c.bf16 %v1723_v49, %v1722_v47  ;;  %v1604_v52 = vadd.f32 %v2621_v50, %v3157_v25  ;;  %v1595_v53 = vpop.f32.mrb[21].mxu1 }
 0x32b   : > { %v1596_v54 = vadd.f32 %v3157_v25, %v1595_v53  ;;  %v2622_v55 = vpop.f32.mrb[22].mxu1 }
 0x32c   : > { %v1696_v56 = vmul.f32 0.01, %v1604_v52  ;;  %v1607_v57 = vadd.f32 %v2622_v55, %v3157_v25  ;;  %v1598_v58 = vpop.f32.mrb[23].mxu1  ;;  %2655 = vmatprep.mubr.msk.bf16.mxu1 %vm1432_vm5, %v1746_v51  ;;  %vm1664_vm9 = vcmp.gt.f32.partialorder %v1604_v52, 0.0 }
 0x32d   : > { %v1694_v59 = vmul.f32 0.01, %v1596_v54  ;;  %v1599_v60 = vadd.f32 %v3157_v25, %v1598_v58  ;;  %2656 = vmatmul.mubr.msk.bf16.gmra.mrb[48].mxu1 %vm1432_vm5, %v1747_v48  ;;  %vm1662_vm10 = vcmp.gt.f32.partialorder %v1596_v54, 0.0  ;;  %v3217_v48 = vld [vmem:[%s3397_s5 + $0x2] ss:$0 sm:$0xff] }
 0x32e   : > { %vm1665_vm11 = vcmp.gt.f32.partialorder %v1607_v57, 0.0  ;;  %v1697_v61 = vmul.f32 0.01, %v1607_v57  ;;  %v1728_v63 = vsel %vm1664_vm9, %v1604_v52, %v1696_v56 }
 0x32f   : > { %vm1663_vm12 = vcmp.gt.f32.partialorder %v1599_v60, 0.0  ;;  %v1695_v62 = vmul.f32 0.01, %v1599_v60  ;;  %v1726_v3 = vsel %vm1662_vm10, %v1596_v54, %v1694_v59  ;;  %v3224_v54 = vld [vmem:[%s3397_s5 + $0x3] ss:$0 sm:$0xff] }
 0x330   : > { %v1729_v2 = vsel %vm1665_vm11, %v1607_v57, %v1697_v61 }
 0x331   : > { %v1749_v4 = vpack.c.bf16 %v1729_v2, %v1728_v63  ;;  %v1727_v5 = vsel %vm1663_vm12, %v1599_v60, %v1695_v62  ;;  %v2625_v6 = vpop.f32.mrb[24].mxu1 }
 0x332   : > { %v1748_v7 = vpack.c.bf16 %v1727_v5, %v1726_v3  ;;  %v1620_v8 = vadd.f32 %v2625_v6, %v3157_v25  ;;  %v1611_v9 = vpop.f32.mrb[25].mxu1 }
 0x333   : > { %v1612_v10 = vadd.f32 %v3157_v25, %v1611_v9  ;;  %v2626_v11 = vpop.f32.mrb[26].mxu1 }
 0x334   : > { %v1700_v12 = vmul.f32 0.01, %v1620_v8  ;;  %v1623_v13 = vadd.f32 %v2626_v11, %v3157_v25  ;;  %v1614_v14 = vpop.f32.mrb[27].mxu1  ;;  %2659 = vmatprep.mubr.msk.bf16.mxu1 %vm1432_vm5, %v1748_v7  ;;  %vm1668_vm13 = vcmp.gt.f32.partialorder %v1620_v8, 0.0 }
 0x335   : > { %v1698_v15 = vmul.f32 0.01, %v1612_v10  ;;  %v1615_v16 = vadd.f32 %v3157_v25, %v1614_v14  ;;  %2660 = vmatmul.mubr.msk.bf16.gmra.mrb[52].mxu1 %vm1432_vm5, %v1749_v4  ;;  %vm1666_vm14 = vcmp.gt.f32.partialorder %v1612_v10, 0.0 }
 0x336   : > { %vm1669_vm15 = vcmp.gt.f32.partialorder %v1623_v13, 0.0  ;;  %v1701_v17 = vmul.f32 0.01, %v1623_v13  ;;  %v1732_v19 = vsel %vm1668_vm13, %v1620_v8, %v1700_v12 }
 0x337   : > { %vm1667_vm0 = vcmp.gt.f32.partialorder %v1615_v16, 0.0  ;;  %v1699_v18 = vmul.f32 0.01, %v1615_v16  ;;  %v1730_v21 = vsel %vm1666_vm14, %v1612_v10, %v1698_v15 }
 0x338   : > { %v1733_v20 = vsel %vm1669_vm15, %v1623_v13, %v1701_v17 }
 0x339   : > { %v1751_v22 = vpack.c.bf16 %v1733_v20, %v1732_v19  ;;  %v1731_v23 = vsel %vm1667_vm0, %v1615_v16, %v1699_v18  ;;  %v2629_v24 = vpop.f32.mrb[28].mxu1 }
 0x33a   : > { %v1750_v26 = vpack.c.bf16 %v1731_v23, %v1730_v21  ;;  %v1636_v27 = vadd.f32 %v2629_v24, %v3157_v25  ;;  %v1627_v28 = vpop.f32.mrb[29].mxu1 }
 0x33b   : > { %v1628_v29 = vadd.f32 %v3157_v25, %v1627_v28  ;;  %v2630_v30 = vpop.f32.mrb[30].mxu1 }
 0x33c   : > { %v1704_v31 = vmul.f32 0.01, %v1636_v27  ;;  %v1639_v32 = vadd.f32 %v2630_v30, %v3157_v25  ;;  %v1630_v33 = vpop.f32.mrb[31].mxu1  ;;  %2663 = vmatprep.mubr.msk.bf16.mxu1 %vm1432_vm5, %v1750_v26  ;;  %vm1672_vm1 = vcmp.gt.f32.partialorder %v1636_v27, 0.0 }
 0x33d   : > { %v1702_v34 = vmul.f32 0.01, %v1628_v29  ;;  %v1631_v35 = vadd.f32 %v3157_v25, %v1630_v33  ;;  %2664 = vmatmul.mubr.msk.bf16.gmra.mrb[56].mxu1 %vm1432_vm5, %v1751_v22  ;;  %vm1670_vm2 = vcmp.gt.f32.partialorder %v1628_v29, 0.0  ;;  %v3210_v25 = vld [vmem:[%s3397_s5 + $0x1] ss:$0 sm:$0xff] }
 0x33e   : > { %vm1673_vm3 = vcmp.gt.f32.partialorder %v1639_v32, 0.0  ;;  %v1705_v36 = vmul.f32 0.01, %v1639_v32  ;;  %v1736_v38 = vsel %vm1672_vm1, %v1636_v27, %v1704_v31 }
 0x33f   : > { %vm1671_vm4 = vcmp.gt.f32.partialorder %v1631_v35, 0.0  ;;  %v1703_v37 = vmul.f32 0.01, %v1631_v35  ;;  %v1734_v40 = vsel %vm1670_vm2, %v1628_v29, %v1702_v34 }
 0x340   : > { %v1737_v39 = vsel %vm1673_vm3, %v1639_v32, %v1705_v36 }
 0x341   : > { %v1753_v41 = vpack.c.bf16 %v1737_v39, %v1736_v38  ;;  %v1735_v0 = vsel %vm1671_vm4, %v1631_v35, %v1703_v37 }
 0x342   : > { %v1752_v42 = vpack.c.bf16 %v1735_v0, %v1734_v40 }
 0x344   : > { %2667 = vmatprep.mubr.msk.bf16.mxu1 %vm1432_vm5, %v1752_v42 }
 0x345   : > { %2668 = vmatmul.mubr.msk.bf16.gmra.mrb[60].mxu1 %vm1432_vm5, %v1753_v41 }
 0x3e0   : > { %v2641_v43 = vpop.f32.mrb[32].mxu1 }
 0x3e1   : > { %v1874_v1 = vadd.f32 %v2641_v43, %v3210_v25  ;;  %v1865_v44 = vpop.f32.mrb[33].mxu1 }
 0x3e2   : > { %v1866_v45 = vadd.f32 %v3210_v25, %v1865_v44  ;;  %v2642_v46 = vpop.f32.mrb[34].mxu1 }
 0x3e3   : > { %vm1994_vm6 = vcmp.gt.f32.partialorder %v1874_v1, 0.0  ;;  %v2026_v47 = vmul.f32 0.01, %v1874_v1  ;;  %v1877_v49 = vadd.f32 %v2642_v46, %v3210_v25  ;;  %v1868_v50 = vpop.f32.mrb[35].mxu1 }
 0x3e4   : > { %vm1992_vm7 = vcmp.gt.f32.partialorder %v1866_v45, 0.0  ;;  %v2024_v51 = vmul.f32 0.01, %v1866_v45  ;;  %v1869_v52 = vadd.f32 %v3210_v25, %v1868_v50 }
 0x3e5   : > { %v2058_v53 = vsel %vm1994_vm6, %v1874_v1, %v2026_v47  ;;  %vm1995_vm8 = vcmp.gt.f32.partialorder %v1877_v49, 0.0  ;;  %v2027_v55 = vmul.f32 0.01, %v1877_v49 }
 0x3e6   : > { %v2095_v56 = vmul.f32 %v3217_v48, %v2058_v53  ;;  %v2056_v57 = vsel %vm1992_vm7, %v1866_v45, %v2024_v51  ;;  %vm1993_vm9 = vcmp.gt.f32.partialorder %v1869_v52, 0.0  ;;  %v2025_v58 = vmul.f32 0.01, %v1869_v52 }
 0x3e7   : > { %v2093_v59 = vmul.f32 %v3217_v48, %v2056_v57  ;;  %v2059_v60 = vsel %vm1995_vm8, %v1877_v49, %v2027_v55 }
 0x3e8   : > { %v2132_v61 = vadd.f32 %v3224_v54, %v2095_v56  ;;  %v2096_v62 = vmul.f32 %v3217_v48, %v2059_v60  ;;  %v2057_v63 = vsel %vm1993_vm9, %v1869_v52, %v2025_v58  ;;  %v2645_v2 = vpop.f32.mrb[36].mxu1 }
 0x3e9   : > { %v2130_v3 = vadd.f32 %v3224_v54, %v2093_v59  ;;  %v2094_v4 = vmul.f32 %v3217_v48, %v2057_v63  ;;  %v1890_v5 = vadd.f32 %v2645_v2, %v3210_v25  ;;  %v1881_v6 = vpop.f32.mrb[37].mxu1 }
 0x3ea   : > { %2164 = vst.msk [vmem:[%s3232_s13 + $0x10] sm:$0xff] %vm1432_vm5, %v2132_v61  ;;  %v2133_v7 = vadd.f32 %v3224_v54, %v2096_v62  ;;  %v1882_v8 = vadd.f32 %v3210_v25, %v1881_v6  ;;  %v2646_v9 = vpop.f32.mrb[38].mxu1 }
 0x3eb   : > { %2162 = vst.msk [vmem:[%s3232_s13] sm:$0xff] %vm1432_vm5, %v2130_v3  ;;  %v2131_v10 = vadd.f32 %v3224_v54, %v2094_v4  ;;  %vm1998_vm10 = vcmp.gt.f32.partialorder %v1890_v5, 0.0  ;;  %v2030_v11 = vmul.f32 0.01, %v1890_v5  ;;  %v1893_v12 = vadd.f32 %v2646_v9, %v3210_v25  ;;  %v1884_v13 = vpop.f32.mrb[39].mxu1 }
 0x3ec   : > { %2165 = vst.msk [vmem:[%s3232_s13 + $0x18] sm:$0xff] %vm1432_vm5, %v2133_v7  ;;  %vm1996_vm11 = vcmp.gt.f32.partialorder %v1882_v8, 0.0  ;;  %v2028_v14 = vmul.f32 0.01, %v1882_v8  ;;  %v1885_v15 = vadd.f32 %v3210_v25, %v1884_v13 }
 0x3ed   : > { %2163 = vst.msk [vmem:[%s3232_s13 + $0x8] sm:$0xff] %vm1432_vm5, %v2131_v10  ;;  %v2062_v16 = vsel %vm1998_vm10, %v1890_v5, %v2030_v11  ;;  %vm1999_vm12 = vcmp.gt.f32.partialorder %v1893_v12, 0.0  ;;  %v2031_v17 = vmul.f32 0.01, %v1893_v12 }
 0x3ee   : > { %v2099_v18 = vmul.f32 %v3217_v48, %v2062_v16  ;;  %v2060_v19 = vsel %vm1996_vm11, %v1882_v8, %v2028_v14  ;;  %vm1997_vm13 = vcmp.gt.f32.partialorder %v1885_v15, 0.0  ;;  %v2029_v20 = vmul.f32 0.01, %v1885_v15 }
 0x3ef   : > { %v2097_v21 = vmul.f32 %v3217_v48, %v2060_v19  ;;  %v2063_v22 = vsel %vm1999_vm12, %v1893_v12, %v2031_v17 }
 0x3f0   : > { %v2136_v23 = vadd.f32 %v3224_v54, %v2099_v18  ;;  %v2100_v24 = vmul.f32 %v3217_v48, %v2063_v22  ;;  %v2061_v26 = vsel %vm1997_vm13, %v1885_v15, %v2029_v20  ;;  %v2649_v27 = vpop.f32.mrb[40].mxu1 }
 0x3f1   : > { %v2134_v28 = vadd.f32 %v3224_v54, %v2097_v21  ;;  %v2098_v29 = vmul.f32 %v3217_v48, %v2061_v26  ;;  %v1906_v30 = vadd.f32 %v2649_v27, %v3210_v25  ;;  %v1897_v31 = vpop.f32.mrb[41].mxu1 }
 0x3f2   : > { %2168 = vst.msk [vmem:[%s3232_s13 + $0x30] sm:$0xff] %vm1432_vm5, %v2136_v23  ;;  %v2137_v32 = vadd.f32 %v3224_v54, %v2100_v24  ;;  %v1898_v33 = vadd.f32 %v3210_v25, %v1897_v31  ;;  %v2650_v34 = vpop.f32.mrb[42].mxu1 }
 0x3f3   : > { %2166 = vst.msk [vmem:[%s3232_s13 + $0x20] sm:$0xff] %vm1432_vm5, %v2134_v28  ;;  %v2135_v35 = vadd.f32 %v3224_v54, %v2098_v29  ;;  %vm2002_vm14 = vcmp.gt.f32.partialorder %v1906_v30, 0.0  ;;  %v2034_v36 = vmul.f32 0.01, %v1906_v30  ;;  %v1909_v37 = vadd.f32 %v2650_v34, %v3210_v25  ;;  %v1900_v38 = vpop.f32.mrb[43].mxu1 }
 0x3f4   : > { %2169 = vst.msk [vmem:[%s3232_s13 + $0x38] sm:$0xff] %vm1432_vm5, %v2137_v32  ;;  %vm2000_vm15 = vcmp.gt.f32.partialorder %v1898_v33, 0.0  ;;  %v2032_v39 = vmul.f32 0.01, %v1898_v33  ;;  %v1901_v40 = vadd.f32 %v3210_v25, %v1900_v38 }
 0x3f5   : > { %2167 = vst.msk [vmem:[%s3232_s13 + $0x28] sm:$0xff] %vm1432_vm5, %v2135_v35  ;;  %v2066_v41 = vsel %vm2002_vm14, %v1906_v30, %v2034_v36  ;;  %vm2003_vm0 = vcmp.gt.f32.partialorder %v1909_v37, 0.0  ;;  %v2035_v0 = vmul.f32 0.01, %v1909_v37 }
 0x3f6   : > { %v2103_v42 = vmul.f32 %v3217_v48, %v2066_v41  ;;  %v2064_v43 = vsel %vm2000_vm15, %v1898_v33, %v2032_v39  ;;  %vm2001_vm1 = vcmp.gt.f32.partialorder %v1901_v40, 0.0  ;;  %v2033_v1 = vmul.f32 0.01, %v1901_v40 }
 0x3f7   : > { %v2101_v44 = vmul.f32 %v3217_v48, %v2064_v43  ;;  %v2067_v45 = vsel %vm2003_vm0, %v1909_v37, %v2035_v0 }
 0x3f8   : > { %v2140_v46 = vadd.f32 %v3224_v54, %v2103_v42  ;;  %v2104_v47 = vmul.f32 %v3217_v48, %v2067_v45  ;;  %v2065_v49 = vsel %vm2001_vm1, %v1901_v40, %v2033_v1  ;;  %v2653_v50 = vpop.f32.mrb[44].mxu1 }
 0x3f9   : > { %v2138_v51 = vadd.f32 %v3224_v54, %v2101_v44  ;;  %v2102_v52 = vmul.f32 %v3217_v48, %v2065_v49  ;;  %v1922_v53 = vadd.f32 %v2653_v50, %v3210_v25  ;;  %v1913_v55 = vpop.f32.mrb[45].mxu1 }
 0x3fa   : > { %2172 = vst.msk [vmem:[%s3232_s13 + $0x50] sm:$0xff] %vm1432_vm5, %v2140_v46  ;;  %v2141_v56 = vadd.f32 %v3224_v54, %v2104_v47  ;;  %v1914_v57 = vadd.f32 %v3210_v25, %v1913_v55  ;;  %v2654_v58 = vpop.f32.mrb[46].mxu1 }
 0x3fb   : > { %2170 = vst.msk [vmem:[%s3232_s13 + $0x40] sm:$0xff] %vm1432_vm5, %v2138_v51  ;;  %v2139_v59 = vadd.f32 %v3224_v54, %v2102_v52  ;;  %vm2006_vm2 = vcmp.gt.f32.partialorder %v1922_v53, 0.0  ;;  %v2038_v60 = vmul.f32 0.01, %v1922_v53  ;;  %v1925_v61 = vadd.f32 %v2654_v58, %v3210_v25  ;;  %v1916_v62 = vpop.f32.mrb[47].mxu1 }
 0x3fc   : > { %2173 = vst.msk [vmem:[%s3232_s13 + $0x58] sm:$0xff] %vm1432_vm5, %v2141_v56  ;;  %vm2004_vm3 = vcmp.gt.f32.partialorder %v1914_v57, 0.0  ;;  %v2036_v63 = vmul.f32 0.01, %v1914_v57  ;;  %v1917_v2 = vadd.f32 %v3210_v25, %v1916_v62 }
 0x3fd   : > { %2171 = vst.msk [vmem:[%s3232_s13 + $0x48] sm:$0xff] %vm1432_vm5, %v2139_v59  ;;  %v2070_v3 = vsel %vm2006_vm2, %v1922_v53, %v2038_v60  ;;  %vm2007_vm4 = vcmp.gt.f32.partialorder %v1925_v61, 0.0  ;;  %v2039_v4 = vmul.f32 0.01, %v1925_v61 }
 0x3fe   : > { %v2107_v5 = vmul.f32 %v3217_v48, %v2070_v3  ;;  %v2068_v6 = vsel %vm2004_vm3, %v1914_v57, %v2036_v63  ;;  %vm2005_vm6 = vcmp.gt.f32.partialorder %v1917_v2, 0.0  ;;  %v2037_v7 = vmul.f32 0.01, %v1917_v2 }
 0x3ff   : > { %v2105_v8 = vmul.f32 %v3217_v48, %v2068_v6  ;;  %v2071_v9 = vsel %vm2007_vm4, %v1925_v61, %v2039_v4 }
 0x400   : > { %v2144_v10 = vadd.f32 %v3224_v54, %v2107_v5  ;;  %v2108_v11 = vmul.f32 %v3217_v48, %v2071_v9  ;;  %v2069_v12 = vsel %vm2005_vm6, %v1917_v2, %v2037_v7  ;;  %v2657_v13 = vpop.f32.mrb[48].mxu1 }
 0x401   : > { %v2142_v14 = vadd.f32 %v3224_v54, %v2105_v8  ;;  %v2106_v15 = vmul.f32 %v3217_v48, %v2069_v12  ;;  %v1938_v16 = vadd.f32 %v2657_v13, %v3210_v25  ;;  %v1929_v17 = vpop.f32.mrb[49].mxu1 }
 0x402   : > { %2176 = vst.msk [vmem:[%s3232_s13 + $0x70] sm:$0xff] %vm1432_vm5, %v2144_v10  ;;  %v2145_v18 = vadd.f32 %v3224_v54, %v2108_v11  ;;  %v1930_v19 = vadd.f32 %v3210_v25, %v1929_v17  ;;  %v2658_v20 = vpop.f32.mrb[50].mxu1 }
 0x403   : > { %2174 = vst.msk [vmem:[%s3232_s13 + $0x60] sm:$0xff] %vm1432_vm5, %v2142_v14  ;;  %v2143_v21 = vadd.f32 %v3224_v54, %v2106_v15  ;;  %vm2010_vm7 = vcmp.gt.f32.partialorder %v1938_v16, 0.0  ;;  %v2042_v22 = vmul.f32 0.01, %v1938_v16  ;;  %v1941_v23 = vadd.f32 %v2658_v20, %v3210_v25  ;;  %v1932_v24 = vpop.f32.mrb[51].mxu1 }
 0x404   : > { %2177 = vst.msk [vmem:[%s3232_s13 + $0x78] sm:$0xff] %vm1432_vm5, %v2145_v18  ;;  %vm2008_vm8 = vcmp.gt.f32.partialorder %v1930_v19, 0.0  ;;  %v2040_v26 = vmul.f32 0.01, %v1930_v19  ;;  %v1933_v27 = vadd.f32 %v3210_v25, %v1932_v24 }
 0x405   : > { %2175 = vst.msk [vmem:[%s3232_s13 + $0x68] sm:$0xff] %vm1432_vm5, %v2143_v21  ;;  %v2074_v28 = vsel %vm2010_vm7, %v1938_v16, %v2042_v22  ;;  %vm2011_vm9 = vcmp.gt.f32.partialorder %v1941_v23, 0.0  ;;  %v2043_v29 = vmul.f32 0.01, %v1941_v23 }
 0x406   : > { %v2111_v30 = vmul.f32 %v3217_v48, %v2074_v28  ;;  %v2072_v31 = vsel %vm2008_vm8, %v1930_v19, %v2040_v26  ;;  %vm2009_vm10 = vcmp.gt.f32.partialorder %v1933_v27, 0.0  ;;  %v2041_v32 = vmul.f32 0.01, %v1933_v27 }
 0x407   : > { %v2109_v33 = vmul.f32 %v3217_v48, %v2072_v31  ;;  %v2075_v34 = vsel %vm2011_vm9, %v1941_v23, %v2043_v29 }
 0x408   : > { %v2148_v35 = vadd.f32 %v3224_v54, %v2111_v30  ;;  %v2112_v36 = vmul.f32 %v3217_v48, %v2075_v34  ;;  %v2073_v37 = vsel %vm2009_vm10, %v1933_v27, %v2041_v32  ;;  %v2661_v38 = vpop.f32.mrb[52].mxu1 }
 0x409   : > { %v2146_v39 = vadd.f32 %v3224_v54, %v2109_v33  ;;  %v2110_v40 = vmul.f32 %v3217_v48, %v2073_v37  ;;  %v1954_v41 = vadd.f32 %v2661_v38, %v3210_v25  ;;  %v1945_v0 = vpop.f32.mrb[53].mxu1 }
 0x40a   : > { %2180 = vst.msk [vmem:[%s3232_s13 + $0x90] sm:$0xff] %vm1432_vm5, %v2148_v35  ;;  %v2149_v42 = vadd.f32 %v3224_v54, %v2112_v36  ;;  %v1946_v43 = vadd.f32 %v3210_v25, %v1945_v0  ;;  %v2662_v1 = vpop.f32.mrb[54].mxu1 }
 0x40b   : > { %2178 = vst.msk [vmem:[%s3232_s13 + $0x80] sm:$0xff] %vm1432_vm5, %v2146_v39  ;;  %v2147_v44 = vadd.f32 %v3224_v54, %v2110_v40  ;;  %vm2014_vm11 = vcmp.gt.f32.partialorder %v1954_v41, 0.0  ;;  %v2046_v45 = vmul.f32 0.01, %v1954_v41  ;;  %v1957_v46 = vadd.f32 %v2662_v1, %v3210_v25  ;;  %v1948_v47 = vpop.f32.mrb[55].mxu1 }
 0x40c   : > { %2181 = vst.msk [vmem:[%s3232_s13 + $0x98] sm:$0xff] %vm1432_vm5, %v2149_v42  ;;  %vm2012_vm12 = vcmp.gt.f32.partialorder %v1946_v43, 0.0  ;;  %v2044_v49 = vmul.f32 0.01, %v1946_v43  ;;  %v1949_v50 = vadd.f32 %v3210_v25, %v1948_v47 }
 0x40d   : > { %2179 = vst.msk [vmem:[%s3232_s13 + $0x88] sm:$0xff] %vm1432_vm5, %v2147_v44  ;;  %v2078_v51 = vsel %vm2014_vm11, %v1954_v41, %v2046_v45  ;;  %vm2015_vm13 = vcmp.gt.f32.partialorder %v1957_v46, 0.0  ;;  %v2047_v52 = vmul.f32 0.01, %v1957_v46 }
 0x40e   : > { %v2115_v53 = vmul.f32 %v3217_v48, %v2078_v51  ;;  %v2076_v55 = vsel %vm2012_vm12, %v1946_v43, %v2044_v49  ;;  %vm2013_vm14 = vcmp.gt.f32.partialorder %v1949_v50, 0.0  ;;  %v2045_v56 = vmul.f32 0.01, %v1949_v50 }
 0x40f   : > { %v2113_v57 = vmul.f32 %v3217_v48, %v2076_v55  ;;  %v2079_v58 = vsel %vm2015_vm13, %v1957_v46, %v2047_v52 }
 0x410   : > { %v2152_v59 = vadd.f32 %v3224_v54, %v2115_v53  ;;  %v2116_v60 = vmul.f32 %v3217_v48, %v2079_v58  ;;  %v2077_v61 = vsel %vm2013_vm14, %v1949_v50, %v2045_v56  ;;  %v2665_v62 = vpop.f32.mrb[56].mxu1 }
 0x411   : > { %v2150_v63 = vadd.f32 %v3224_v54, %v2113_v57  ;;  %v2114_v2 = vmul.f32 %v3217_v48, %v2077_v61  ;;  %v1970_v3 = vadd.f32 %v2665_v62, %v3210_v25  ;;  %v1961_v4 = vpop.f32.mrb[57].mxu1 }
 0x412   : > { %2184 = vst.msk [vmem:[%s3232_s13 + $0xb0] sm:$0xff] %vm1432_vm5, %v2152_v59  ;;  %v2153_v5 = vadd.f32 %v3224_v54, %v2116_v60  ;;  %v1962_v6 = vadd.f32 %v3210_v25, %v1961_v4  ;;  %v2666_v7 = vpop.f32.mrb[58].mxu1 }
 0x413   : > { %2182 = vst.msk [vmem:[%s3232_s13 + $0xa0] sm:$0xff] %vm1432_vm5, %v2150_v63  ;;  %v2151_v8 = vadd.f32 %v3224_v54, %v2114_v2  ;;  %vm2018_vm15 = vcmp.gt.f32.partialorder %v1970_v3, 0.0  ;;  %v2050_v9 = vmul.f32 0.01, %v1970_v3  ;;  %v1973_v10 = vadd.f32 %v2666_v7, %v3210_v25  ;;  %v1964_v11 = vpop.f32.mrb[59].mxu1 }
 0x414   : > { %2185 = vst.msk [vmem:[%s3232_s13 + $0xb8] sm:$0xff] %vm1432_vm5, %v2153_v5  ;;  %vm2016_vm0 = vcmp.gt.f32.partialorder %v1962_v6, 0.0  ;;  %v2048_v12 = vmul.f32 0.01, %v1962_v6  ;;  %v1965_v13 = vadd.f32 %v3210_v25, %v1964_v11 }
 0x415   : > { %2183 = vst.msk [vmem:[%s3232_s13 + $0xa8] sm:$0xff] %vm1432_vm5, %v2151_v8  ;;  %v2082_v14 = vsel %vm2018_vm15, %v1970_v3, %v2050_v9  ;;  %vm2019_vm1 = vcmp.gt.f32.partialorder %v1973_v10, 0.0  ;;  %v2051_v15 = vmul.f32 0.01, %v1973_v10 }
 0x416   : > { %v2119_v16 = vmul.f32 %v3217_v48, %v2082_v14  ;;  %v2080_v17 = vsel %vm2016_vm0, %v1962_v6, %v2048_v12  ;;  %vm2017_vm2 = vcmp.gt.f32.partialorder %v1965_v13, 0.0  ;;  %v2049_v18 = vmul.f32 0.01, %v1965_v13 }
 0x417   : > { %v2117_v19 = vmul.f32 %v3217_v48, %v2080_v17  ;;  %v2083_v20 = vsel %vm2019_vm1, %v1973_v10, %v2051_v15 }
 0x418   : > { %v2156_v21 = vadd.f32 %v3224_v54, %v2119_v16  ;;  %v2120_v22 = vmul.f32 %v3217_v48, %v2083_v20  ;;  %v2081_v23 = vsel %vm2017_vm2, %v1965_v13, %v2049_v18  ;;  %v2669_v24 = vpop.f32.mrb[60].mxu1 }
 0x419   : > { %v2154_v26 = vadd.f32 %v3224_v54, %v2117_v19  ;;  %v2118_v27 = vmul.f32 %v3217_v48, %v2081_v23  ;;  %v1986_v28 = vadd.f32 %v2669_v24, %v3210_v25  ;;  %v1977_v29 = vpop.f32.mrb[61].mxu1 }
 0x41a   : > { %2188 = vst.msk [vmem:[%s3232_s13 + $0xd0] sm:$0xff] %vm1432_vm5, %v2156_v21  ;;  %v2157_v30 = vadd.f32 %v3224_v54, %v2120_v22  ;;  %v1978_v31 = vadd.f32 %v3210_v25, %v1977_v29  ;;  %v2670_v32 = vpop.f32.mrb[62].mxu1 }
 0x41b   : > { %2186 = vst.msk [vmem:[%s3232_s13 + $0xc0] sm:$0xff] %vm1432_vm5, %v2154_v26  ;;  %v2155_v33 = vadd.f32 %v3224_v54, %v2118_v27  ;;  %vm2022_vm3 = vcmp.gt.f32.partialorder %v1986_v28, 0.0  ;;  %v2054_v34 = vmul.f32 0.01, %v1986_v28  ;;  %v1989_v35 = vadd.f32 %v2670_v32, %v3210_v25  ;;  %v1980_v36 = vpop.f32.mrb[63].mxu1 }
 0x41c   : > { %2189 = vst.msk [vmem:[%s3232_s13 + $0xd8] sm:$0xff] %vm1432_vm5, %v2157_v30  ;;  %vm2020_vm4 = vcmp.gt.f32.partialorder %v1978_v31, 0.0  ;;  %v2052_v37 = vmul.f32 0.01, %v1978_v31  ;;  %v1981_v38 = vadd.f32 %v3210_v25, %v1980_v36 }
 0x41d   : > { %2187 = vst.msk [vmem:[%s3232_s13 + $0xc8] sm:$0xff] %vm1432_vm5, %v2155_v33  ;;  %v2086_v39 = vsel %vm2022_vm3, %v1986_v28, %v2054_v34  ;;  %vm2023_vm6 = vcmp.gt.f32.partialorder %v1989_v35, 0.0  ;;  %v2055_v40 = vmul.f32 0.01, %v1989_v35 }
 0x41e   : > { %v2123_v41 = vmul.f32 %v3217_v48, %v2086_v39  ;;  %v2084_v0 = vsel %vm2020_vm4, %v1978_v31, %v2052_v37  ;;  %vm2021_vm7 = vcmp.gt.f32.partialorder %v1981_v38, 0.0  ;;  %v2053_v42 = vmul.f32 0.01, %v1981_v38 }
 0x41f   : > { %v2121_v43 = vmul.f32 %v3217_v48, %v2084_v0  ;;  %v2087_v1 = vsel %vm2023_vm6, %v1989_v35, %v2055_v40 }
 0x420   : > { %v2160_v44 = vadd.f32 %v3224_v54, %v2123_v41  ;;  %v2124_v25 = vmul.f32 %v3217_v48, %v2087_v1  ;;  %v2085_v45 = vsel %vm2021_vm7, %v1981_v38, %v2053_v42 }
 0x421   : > { %v2158_v46 = vadd.f32 %v3224_v54, %v2121_v43  ;;  %v2122_v47 = vmul.f32 %v3217_v48, %v2085_v45 }
 0x422   : > { %2192 = vst.msk [vmem:[%s3232_s13 + $0xf0] sm:$0xff] %vm1432_vm5, %v2160_v44  ;;  %v2161_v49 = vadd.f32 %v3224_v54, %v2124_v25 }
 0x423   : > { %2190 = vst.msk [vmem:[%s3232_s13 + $0xe0] sm:$0xff] %vm1432_vm5, %v2158_v46  ;;  %v2159_v50 = vadd.f32 %v3224_v54, %v2122_v47 }
 0x424   : > { %2193 = vst.msk [vmem:[%s3232_s13 + $0xf8] sm:$0xff] %vm1432_vm5, %v2161_v49 }
 0x425   : > { %2191 = vst.msk [vmem:[%s3232_s13 + $0xe8] sm:$0xff] %vm1432_vm5, %v2159_v50 }
 0x426 PF: > { %s16_s21 = sadd.s32 1, %s2787_s21  }
 0x427   : > { %p13_p4 = scmp.ge.s32.totalorder %s16_s21, 6  }
 0x429   :  { %15 = sbr.rel (!%p13_p4) target bundleno = 1 (0x1), region = 77 }

</bundles_post_ra>
